<compile_context>
chip_gen: v5e
topology: v5e:2x2
jax: 0.10.0
libtpu: 0.0.40
codegen_flags: <defaults>
</compile_context>

<pallas_src>
import jax
import jax.numpy as jnp
from jax import lax
from jax.experimental import pallas as pl
from jax.experimental.pallas import tpu as pltpu


_AUG = 8  # sublane-aligned augmentation block: 1 "ones" row + 7 zero rows


def _self_attention_kernel(x_ref, w_ref, bv_ref, gamma_ref, o_ref, xa_ref):
    """One batch element of SAGAN self-attention (key-major score layout).

    x_ref    : (1, C, N)    f32   input, channels on sublanes, N on lanes
    w_ref    : (2C+8, C)    bf16  fused weights [Wq^T·Wk ; bq^T·Wk ; 0 ; Wv]
    bv_ref   : (C, 1)       f32   value-conv bias
    gamma_ref: (1,)         f32   learnable residual scale (SMEM)
    o_ref    : (1, C, N)    f32   output (lane-dense)
    xa_ref   : (C+8, N)     bf16  VMEM scratch: x augmented with a ones row
    """
    x = x_ref[0]                                    # (C, N) f32
    C, N = x.shape
    x_bf = x.astype(jnp.bfloat16)

    # One fused MXU projection for everything that multiplies x:
    #   rows [0, C)       : u = (Wq^T Wk) @ x      (folded q/k projections)
    #   row  C            : r = (bq^T Wk) @ x      (softmax-relevant bias term)
    #   rows [C+1, C+8)   : 0                      (alignment padding)
    #   rows [C+8, 2C+8)  : Wv @ x
    proj = jnp.dot(w_ref[...], x_bf,
                   preferred_element_type=jnp.float32)              # (2C+8, N)
    ua = proj[:C + _AUG].astype(jnp.bfloat16)                       # (C+8, N)
    v = proj[C + _AUG:] + bv_ref[...]                               # (C, N) f32

    # Augment x with a constant-one row (+ zero pad, all 8-row aligned) so the
    # r[j] bias term rides along in the score contraction:
    #   S[j, i] = x_i^T (Wq^T Wk) x_j + (bq^T Wk) x_j
    xa_ref[:C, :] = x_bf
    rid = lax.broadcasted_iota(jnp.int32, (_AUG, N), 0)
    xa_ref[C:, :] = jnp.where(rid == 0, 1.0, 0.0).astype(jnp.bfloat16)

    # Scores with keys j on sublanes and queries i on lanes -> the P·V matmul
    # below is a plain (M,K)@(K,N) (no transposed (N,N) operand) and the
    # softmax reductions produce lane-dense (1, N) rows directly.
    s = lax.dot_general(ua, xa_ref[...], (((0,), (0,)), ((), ())),
                        preferred_element_type=jnp.float32)         # (N, N)

    # Column-wise softmax over keys (axis 0); normalization deferred.
    m = jnp.max(s, axis=0, keepdims=True)                           # (1, N)
    e = jnp.exp(s - m)                                              # (N, N) f32
    inv_l = pl.reciprocal(jnp.sum(e, axis=0, keepdims=True),
                          approx=True)                              # (1, N)

    # out[c, i] = sum_j v[c, j] * attn[i, j]  (standard MXU matmul).
    out_un = jnp.dot(v.astype(jnp.bfloat16), e.astype(jnp.bfloat16),
                     preferred_element_type=jnp.float32)            # (C, N)

    # Residual: y = gamma * out + x  (single lane-dense full-block store).
    o_ref[0] = (gamma_ref[0] * (out_un * inv_l) + x).astype(o_ref.dtype)


def self_attention_forward(x, wq, bq, wk, bk, wv, bv, gamma):
    """Forward of SelfAttention. x is NCHW (B, C, W, H); returns same shape.

    Note: bk only contributes softmax-invariant (per-query constant) terms to
    the energy, so it drops out of the forward output exactly.
    """
    del bk  # mathematically irrelevant to the module's output (see note above)
    B, C, W, H = x.shape
    N = W * H
    Cq = wq.shape[0]                      # = C // 8

    x_cn = x.reshape(B, C, N)             # lane-dense (C, N) per batch element

    hp = lax.Precision.HIGHEST
    wq2 = wq.reshape(Cq, C).astype(jnp.float32)
    wk2 = wk.reshape(Cq, C).astype(jnp.float32)
    wv2 = wv.reshape(C, C).astype(jnp.float32)

    # Algebraic fold of the q/k projections into the score matmul.
    m_fold = jnp.dot(wq2.T, wk2, precision=hp)                # (C, C) = Wq^T Wk
    r_fold = jnp.dot(bq.reshape(1, Cq), wk2, precision=hp)    # (1, C) = bq^T Wk

    w_all = jnp.concatenate(
        [m_fold, r_fold, jnp.zeros((_AUG - 1, C), jnp.float32), wv2],
        axis=0).astype(jnp.bfloat16)                          # (2C+8, C)
    bv2 = bv.reshape(C, 1).astype(jnp.float32)
    gamma1 = jnp.asarray(gamma, jnp.float32).reshape(1)

    out_cn = pl.pallas_call(
        _self_attention_kernel,
        out_shape=jax.ShapeDtypeStruct((B, C, N), x.dtype),
        grid=(B,),
        in_specs=[
            pl.BlockSpec((1, C, N), lambda b: (b, 0, 0)),            # x
            pl.BlockSpec((2 * C + _AUG, C), lambda b: (0, 0)),       # fused W
            pl.BlockSpec((C, 1), lambda b: (0, 0)),                  # bv
            pl.BlockSpec(memory_space=pltpu.MemorySpace.SMEM),       # gamma
        ],
        out_specs=pl.BlockSpec((1, C, N), lambda b: (b, 0, 0)),
        scratch_shapes=[pltpu.VMEM((C + _AUG, N), jnp.bfloat16)],
        compiler_params=pltpu.CompilerParams(
            dimension_semantics=("parallel",)),
    )(x_cn, w_all, bv2, gamma1)

    return out_cn.reshape(B, C, W, H)


def _ref_forward(x, wq, bq, wk, bk, wv, bv, gamma):
    """Pure-JAX reference matching the PyTorch SelfAttention.forward."""
    B, C, W, H = x.shape
    N = W * H
    xf = x.reshape(B, C, N)
    hp = lax.Precision.HIGHEST
    wq2 = wq.reshape(-1, C); wk2 = wk.reshape(-1, C); wv2 = wv.reshape(C, C)
    q = jnp.einsum("oc,bcn->bon", wq2, xf, precision=hp) + bq[None, :, None]
    k = jnp.einsum("oc,bcn->bon", wk2, xf, precision=hp) + bk[None, :, None]
    v = jnp.einsum("oc,bcn->bon", wv2, xf, precision=hp) + bv[None, :, None]
    energy = jnp.einsum("bci,bcj->bij", q, k, precision=hp)     # (B, N, N)
    attn = jax.nn.softmax(energy, axis=-1)
    out = jnp.einsum("bcj,bij->bci", v, attn, precision=hp)     # (B, C, N)
    out = jnp.asarray(gamma, jnp.float32).reshape(()) * out + xf
    return out.reshape(B, C, W, H)


if __name__ == "__main__":
    key = jax.random.PRNGKey(0)
    k1, k2, k3, k4, k5, k6, k7 = jax.random.split(key, 7)

    # Small shapes consistent with the module: in_dim=32 (divisible by 8).
    B, C, W, H = 2, 32, 16, 16
    Cq = C // 8

    x = jax.random.normal(k1, (B, C, W, H), jnp.float32)

    # PyTorch Conv2d-style uniform(-1/sqrt(fan_in), 1/sqrt(fan_in)) init.
    bound = 1.0 / (C ** 0.5)
    wq = jax.random.uniform(k2, (Cq, C, 1, 1), jnp.float32, -bound, bound)
    bq = jax.random.uniform(k3, (Cq,), jnp.float32, -bound, bound)
    wk = jax.random.uniform(k4, (Cq, C, 1, 1), jnp.float32, -bound, bound)
    bk = jax.random.uniform(k5, (Cq,), jnp.float32, -bound, bound)
    wv = jax.random.uniform(k6, (C, C, 1, 1), jnp.float32, -bound, bound)
    bv = jax.random.uniform(k7, (C,), jnp.float32, -bound, bound)
    # PyTorch init is gamma = 0 (output == x); use a nonzero value so the
    # attention path is actually exercised by the check.
    gamma = jnp.array([0.5], jnp.float32)

    out = self_attention_forward(x, wq, bq, wk, bk, wv, bv, gamma)
    out = jax.block_until_ready(out)

    ref = _ref_forward(x, wq, bq, wk, bk, wv, bv, gamma)
    assert out.shape == (B, C, W, H), out.shape
    # Tolerance reflects bf16 MXU operands (+approx reciprocal) vs a HIGHEST-
    # precision f32 reference; measured error is ~1e-3, bound set at 1e-2.
    if not jnp.allclose(out, ref, atol=1e-2, rtol=1e-2):
        err = jnp.max(jnp.abs(out - ref))
        raise AssertionError(
            f"Pallas kernel output mismatches JAX reference (max err {err})")
    print("KERNEL_OK")
</pallas_src>

<mosaic_0001>
module attributes {stable_mosaic.version = 11 : i64} {
  func.func @_self_attention_kernel(%arg0: i32, %arg1: memref<1x32x256xf32, #tpu.memory_space<vmem>>, %arg2: memref<72x32xbf16, #tpu.memory_space<vmem>>, %arg3: memref<32x1xf32, #tpu.memory_space<vmem>>, %arg4: memref<1xf32, #tpu.memory_space<smem>>, %arg5: memref<1x32x256xf32, #tpu.memory_space<vmem>>, %arg6: memref<40x256xbf16, #tpu.memory_space<vmem>>) attributes {dimension_semantics = [#tpu.dimension_semantics<parallel>], iteration_bounds = array<i64: 2>, scalar_prefetch = 0 : i64, scratch_operands = 1 : i64, tpu.core_type = #tpu.core_type<tc>, window_params = [{transform_indices = @transform_0, window_bounds = array<i64: 1, 32, 256>}, {pipeline_mode = #tpu.pipeline_mode<synchronous>, transform_indices = @transform_1, window_bounds = array<i64: 72, 32>}, {pipeline_mode = #tpu.pipeline_mode<synchronous>, transform_indices = @transform_2, window_bounds = array<i64: 32, 1>}, {transform_indices = @transform_3, window_bounds = array<i64: 1>}, {transform_indices = @transform_4, window_bounds = array<i64: 1, 32, 256>}]} {
    %c0 = arith.constant 0 : index
    %c0_0 = arith.constant 0 : index
    %c0_1 = arith.constant 0 : index
    %0 = vector.load %arg1[%c0, %c0_0, %c0_1] : memref<1x32x256xf32, #tpu.memory_space<vmem>>, vector<1x32x256xf32>
    %1 = vector.shape_cast %0 : vector<1x32x256xf32> to vector<32x256xf32>
    %2 = arith.truncf %1 : vector<32x256xf32> to vector<32x256xbf16>
    %c0_2 = arith.constant 0 : index
    %c0_3 = arith.constant 0 : index
    %3 = vector.load %arg2[%c0_2, %c0_3] : memref<72x32xbf16, #tpu.memory_space<vmem>>, vector<72x32xbf16>
    %cst = arith.constant dense<0.000000e+00> : vector<72x256xf32>
    %4 = tpu.matmul %3, %2, %cst {dimension_numbers = #tpu.dot_dimension_numbers<[1], [0], [0], [1], [0, 0, 1, 1], [], []>} : vector<72x32xbf16>, vector<32x256xbf16>, vector<72x256xf32> -> vector<72x256xf32>
    %5 = vector.extract_strided_slice %4 {offsets = [0, 0], sizes = [40, 256], strides = [1, 1]} : vector<72x256xf32> to vector<40x256xf32>
    %6 = arith.truncf %5 : vector<40x256xf32> to vector<40x256xbf16>
    %7 = vector.extract_strided_slice %4 {offsets = [40, 0], sizes = [32, 256], strides = [1, 1]} : vector<72x256xf32> to vector<32x256xf32>
    %c0_4 = arith.constant 0 : index
    %c0_5 = arith.constant 0 : index
    %8 = vector.load %arg3[%c0_4, %c0_5] : memref<32x1xf32, #tpu.memory_space<vmem>>, vector<32x1xf32>
    %9 = vector.broadcast %8 : vector<32x1xf32> to vector<32x256xf32>
    %10 = arith.addf %7, %9 : vector<32x256xf32>
    %c0_6 = arith.constant 0 : index
    %c0_7 = arith.constant 0 : index
    %11 = vector.load %arg6[%c0_6, %c0_7] : memref<40x256xbf16, #tpu.memory_space<vmem>>, vector<32x256xbf16>
    tpu.vector_store %arg6[%c0_6, %c0_7], %2 {strides = array<i32>} : memref<40x256xbf16, #tpu.memory_space<vmem>>, vector<32x256xbf16>,
    %12 = tpu.iota {dimensions = array<i32: 0>} : vector<8x256xi32>
    %c0_i32 = arith.constant 0 : i32
    %13 = vector.broadcast %c0_i32 : i32 to vector<8x256xi32>
    %14 = arith.cmpi eq, %12, %13 : vector<8x256xi32>
    %cst_8 = arith.constant 1.000000e+00 : f32
    %cst_9 = arith.constant 0.000000e+00 : f32
    %15 = vector.broadcast %cst_8 : f32 to vector<8x256xf32>
    %16 = vector.broadcast %cst_9 : f32 to vector<8x256xf32>
    %17 = arith.select %14, %15, %16 : vector<8x256xi1>, vector<8x256xf32>
    %18 = arith.truncf %17 : vector<8x256xf32> to vector<8x256xbf16>
    %c32 = arith.constant 32 : index
    %c0_10 = arith.constant 0 : index
    %19 = vector.load %arg6[%c32, %c0_10] : memref<40x256xbf16, #tpu.memory_space<vmem>>, vector<8x256xbf16>
    tpu.vector_store %arg6[%c32, %c0_10], %18 {strides = array<i32>} : memref<40x256xbf16, #tpu.memory_space<vmem>>, vector<8x256xbf16>,
    %c0_11 = arith.constant 0 : index
    %c0_12 = arith.constant 0 : index
    %20 = vector.load %arg6[%c0_11, %c0_12] : memref<40x256xbf16, #tpu.memory_space<vmem>>, vector<40x256xbf16>
    %cst_13 = arith.constant dense<0.000000e+00> : vector<256x256xf32>
    %21 = tpu.matmul %6, %20, %cst_13 {dimension_numbers = #tpu.dot_dimension_numbers<[0], [0], [1], [1], [0, 1, 1, 1], [], []>} : vector<40x256xbf16>, vector<40x256xbf16>, vector<256x256xf32> -> vector<256x256xf32>
    %cst_14 = arith.constant dense<0xFF800000> : vector<256xf32>
    %22 = vector.multi_reduction <maximumf>, %21, %cst_14 [0] : vector<256x256xf32> to vector<256xf32>
    %23 = vector.shape_cast %22 : vector<256xf32> to vector<1x256xf32>
    %24 = vector.broadcast %23 : vector<1x256xf32> to vector<256x256xf32>
    %25 = arith.subf %21, %24 : vector<256x256xf32>
    %26 = math.exp %25 : vector<256x256xf32>
    %cst_15 = arith.constant dense<0.000000e+00> : vector<256xf32>
    %27 = vector.multi_reduction <add>, %26, %cst_15 [0] : vector<256x256xf32> to vector<256xf32>
    %28 = vector.shape_cast %27 : vector<256xf32> to vector<1x256xf32>
    %29 = tpu.reciprocal %28 {approx = true} : vector<1x256xf32> -> vector<1x256xf32>
    %30 = arith.truncf %10 : vector<32x256xf32> to vector<32x256xbf16>
    %31 = arith.truncf %26 : vector<256x256xf32> to vector<256x256xbf16>
    %cst_16 = arith.constant dense<0.000000e+00> : vector<32x256xf32>
    %32 = tpu.matmul %30, %31, %cst_16 {dimension_numbers = #tpu.dot_dimension_numbers<[1], [0], [0], [1], [0, 0, 1, 1], [], []>} : vector<32x256xbf16>, vector<256x256xbf16>, vector<32x256xf32> -> vector<32x256xf32>
    %c0_17 = arith.constant 0 : index
    %33 = memref.load %arg4[%c0_17] : memref<1xf32, #tpu.memory_space<smem>>
    %34 = vector.broadcast %29 : vector<1x256xf32> to vector<32x256xf32>
    %35 = arith.mulf %32, %34 : vector<32x256xf32>
    %36 = vector.broadcast %33 : f32 to vector<32x256xf32>
    %37 = arith.mulf %36, %35 : vector<32x256xf32>
    %38 = arith.addf %37, %1 : vector<32x256xf32>
    %c0_18 = arith.constant 0 : index
    %c0_19 = arith.constant 0 : index
    %c0_20 = arith.constant 0 : index
    %39 = vector.load %arg5[%c0_18, %c0_19, %c0_20] : memref<1x32x256xf32, #tpu.memory_space<vmem>>, vector<1x32x256xf32>
    %40 = vector.shape_cast %39 : vector<1x32x256xf32> to vector<32x256xf32>
    %41 = vector.shape_cast %38 : vector<32x256xf32> to vector<1x32x256xf32>
    tpu.vector_store %arg5[%c0_18, %c0_19, %c0_20], %41 {strides = array<i32>} : memref<1x32x256xf32, #tpu.memory_space<vmem>>, vector<1x32x256xf32>,
    return
  }
  func.func @transform_0(%arg0: i32) -> (i32, i32, i32) {
    %c0_i32 = arith.constant 0 : i32
    %c0_i32_0 = arith.constant 0 : i32
    %c0_i32_1 = arith.constant 0 : i32
    return %arg0, %c0_i32, %c0_i32_0 : i32, i32, i32
  }
  func.func @transform_1(%arg0: i32) -> (i32, i32) {
    %c0_i32 = arith.constant 0 : i32
    %c0_i32_0 = arith.constant 0 : i32
    %c0_i32_1 = arith.constant 0 : i32
    return %c0_i32, %c0_i32_0 : i32, i32
  }
  func.func @transform_2(%arg0: i32) -> (i32, i32) {
    %c0_i32 = arith.constant 0 : i32
    %c0_i32_0 = arith.constant 0 : i32
    %c0_i32_1 = arith.constant 0 : i32
    return %c0_i32, %c0_i32_0 : i32, i32
  }
  func.func @transform_3(%arg0: i32) -> i32 {
    %c0_i32 = arith.constant 0 : i32
    %c0_i32_0 = arith.constant 0 : i32
    return %c0_i32 : i32
  }
  func.func @transform_4(%arg0: i32) -> (i32, i32, i32) {
    %c0_i32 = arith.constant 0 : i32
    %c0_i32_0 = arith.constant 0 : i32
    %c0_i32_1 = arith.constant 0 : i32
    return %arg0, %c0_i32, %c0_i32_0 : i32, i32, i32
  }
}

</mosaic_0001>

<bundles_post_ra>
// kernel: tpu_custom_call.1
= control target key start
LH: loop header
LB: loop body
LE: loop exit
PB: predicated region body
PF: predicated region fallthrough
CT: control target
= control target key end

     0   :  { %s2529_s0 = inlined_call_operand.hbm [shape: f32[2,32,256], index: 0, kind: input, shape index: {}]   ;;  %s2530_s1 = inlined_call_operand.vmem [shape: bf16[72,32], index: 1, kind: input, shape index: {}]   ;;  %s2531_s2 = inlined_call_operand.vmem [shape: f32[32,1], index: 2, kind: input, shape index: {}]   ;;  %s2532_s3 = inlined_call_operand.<no memory space> [shape: f32[1], index: 3, kind: input, shape index: {}]   ;;  %s2533_s4 = inlined_call_operand.hbm [shape: f32[2,32,256], index: 4, kind: output, shape index: {}]  }
   0x1   :  { %9 = sst [smem:[#allocation3]] %s2532_s3 }
   0x2   :  { %10 = vsyncpa [#allocation5], 0 }
   0x3   :  { %12 = vsyncpa [#allocation5 + $0x1], 0 }
   0x4   :  { %13 = vsyncpa [#allocation6], 0 }
   0x5   :  { %15 = vsyncpa [#allocation6 + $0x1], 0  ;;  %s1710_s17 = smov 0   ;;  %s1712_s18 = smov 0  }
   0x6   :  { %s1714_s19 = smov 0   ;;  %s1716_s20 = smov 0  }
   0x7 LB: > { %s1731_s3 = sadd.s32 4294967295, %s1674_s20   ;;  %s1279_s21 = sadd.s32 4294967294, %s1674_s20   ;;  %s1674_s20 = sphi %s1716_s20, %s2629_s20   ;;  %s1670_s19 = sphi %s1714_s19, %s2628_s19   ;;  %s1666_s18 = sphi %s1712_s18, %s2627_s18   ;;  %s1662_s17 = sphi %s1710_s17, %s2626_s17  }
   0x8   : > { %s1735_s22 = sadd.s32 1, %s1674_s20   ;;  %s28_s23 = sadd.s32 1, %s1670_s19 }
   0x9   : > { %s25_s24 = ssub.s32 %s1674_s20, %s1735_s22  ;;  %p35_p0 = scmp.ne.s32.totalorder %s1670_s19, %s1666_s18 }
   0xa   : > { %p26_p1 = scmp.eq.s32.totalorder %s25_s24, 0  ;;  %p36_p2 = scmp.eq.s32.totalorder %s1674_s20, 0 }
   0xb   : > { %p41_p3 = scmp.ne.s32.totalorder %s1666_s18, %s1662_s17  ;;  %p42_p4 = scmp.eq.s32.totalorder %s1731_s3, 0 }
   0xc   : > { %s1747_s25 = scalar_select %p26_p1, %s1670_s19, %s28_s23  }
   0xd   : > { %p1749_p5 = por %p36_p2, %p35_p0  ;;  %p1753_p6 = por %p42_p4, %p41_p3 }
   0xe   : > { %p128_p7 = scmp.eq.s32.totalorder %s1731_s3, 1  ;;  %p134_p8 = scmp.eq.s32.totalorder %s1279_s21, 1 }
   0xf   : > { %p1395_p10 = scmp.lt.s32.totalorder %s1674_s20, 2  ;;  %s163_s30 = sand.u32 1, %s1670_s19  }
  0x10   : > { %p1760_p11 = por %p128_p7, %p35_p0  ;;  %p1764_p12 = por %p134_p8, %p41_p3 }
  0x11   : > { %s1367_s5 = sshll.u32 %s1674_s20, 6  ;;  %s1282_s6 = sshll.u32 %s163_s30, 6 }
  0x12   : > { %s172_s9 = scalar_lea.hbm %s2529_s0, %s1367_s5  ;;  %s167_s11 = scalar_lea.vmem [#allocation4], %s1282_s6 }
  0x13   : > { %s173_s10 = sshll.u32 %s172_s9, 4  ;;  %s175_s12 = sshll.u32 %s167_s11, 4  ;;  %s174_s10 = int_to_ptr.hbm [resolvable:$true] %s173_s10  ;;  %s176_s12 = int_to_ptr.vmem [resolvable:$true] %s175_s12 }
  0x14   : > { %p1775_p13 = pnand %p1395_p10, %p1749_p5  ;;  %p1285_p0 = scmp.ge.s32.totalorder %s1674_s20, 1 }
  0x15   : > { %p183_p1 = scmp.lt.s32.totalorder %s1674_s20, 3  ;;  %s164_s14 = scalar_lea.sflag [#allocation5], %s163_s30 }
  0x16   : > { %s1578_s15 = sshra.s32 %s174_s10, 4  ;;  %p1582_p3 = pneg %p1775_p13  ;;  %s1579_s15 = int_to_ptr.hbm [resolvable:$true] %s1578_s15 }
  0x17   : > { %s1580_s16 = scalar_lea.hbm %s1579_s15, 64  ;;  %s1585_s24 = scalar_lea.hbm %s2529_s0, 128 }
  0x18   : > { %p1581_p2 = scmp.ne.s32.totalorder %s1579_s15, %s1580_s16  ;;  %p1586_p5 = scmp.lt.s32.totalorder %s1579_s15, %s2529_s0 }
  0x19   : > { %p1587_p8 = scmp.lt.s32.totalorder %s1585_s24, %s1580_s16 }
  0x1a   : > { %p1583_p4 = pnand %p1582_p3, %p1581_p2 }
  0x1b   : > { %p1588_p10 = por %p1587_p8, %p1586_p5 }
  0x1c   : > { %p1584_p7 = pneg %p1583_p4 }
  0x1e   : > { %p1589_p9 = pnand %p1588_p10, %p1584_p7 }
  0x20   : > { %1592 = shalt.err (!%p1589_p9)
}
  0x21   : > { %s1676_s30 = smov 256   ;;  %s1677_s6 = smov 16  }
  0x22   : > { %1390 = dma.hbm_to_vmem [thread:$0]  (!%p1775_p13), %s174_s10, 1024, %s176_s12, %s164_s14, %s1676_s30, %s1676_s30, %s1677_s6  }
  0x23   : > { %p184_p2 = pnand %p1285_p0, %p183_p1 }
  0x25   : > { %187 = sbr.rel (%p184_p2) target bundleno = 1034 (0x40a), region = 36 }
  0x2a   : > { %s1796_s7 = sand.u32 1, %s1666_s18  }
  0x2b   : > { %s1286_s8 = sshll.u32 %s1796_s7, 6  ;;  %s190_s9 = scalar_lea.sflag [#allocation5], %s1796_s7 }
  0x2c   : > { %s1802_s11 = scalar_lea.vmem [#allocation4], %s1286_s8 }
  0x2d   : > { %1653 = dma.done.wait (%p1753_p6), %s190_s9, 1024  }
  0x2e   : > { %1655 = vsyncadd (%p1753_p6), %s190_s9, 4294966272  ;;  %v224_v0 = vld [vmem:[%s1802_s11 + $0x20] sm:$0xff]  ;;  %v225_v1 = vld [vmem:[%s1802_s11 + $0x28] sm:$0xff]  ;;  %vm284_vm0 = vcmask 261120   ;;  %v1678_v27 = vmov 0   ;;  %v408_v40 = vlaneseq  ;;  %v1679_v46 = vmov 0.0  }
  0x2f   : > { %v226_v2 = vld [vmem:[%s1802_s11 + $0x30] sm:$0xff]  ;;  %v227_v3 = vld [vmem:[%s1802_s11 + $0x38] sm:$0xff]  ;;  %v230_v4 = vpack.c.bf16 %v225_v1, %v224_v0  ;;  %v220_v5 = vld [vmem:[%s1802_s11] sm:$0xff]  ;;  %1435 = vset.pattern.permute.xlu1 %v1678_v27  ;;  %1436 = vset.pattern.permute.xlu2 %v1678_v27  ;;  %vm517_vm2 = vcmask 1043456   ;;  %vm468_vm3 = vcmask 326656   ;;  %s1156_s13 = sld [smem:[#allocation3]] }
  0x30   : > { %v221_v6 = vld [vmem:[%s1802_s11 + $0x8] sm:$0xff]  ;;  %v231_v7 = vpack.c.bf16 %v227_v3, %v226_v2  ;;  %v222_v8 = vld [vmem:[%s1802_s11 + $0x10] sm:$0xff]  ;;  %v223_v9 = vld [vmem:[%s1802_s11 + $0x18] sm:$0xff]  ;;  %v409_v42 = vshrl.u32 %v408_v40, 7  ;;  %s2471_s14 = scalar_lea.vmem [#allocation7], %s1286_s8  ;;  %s1376_s8 = sshll.u32 %s1731_s3, 6 }
  0x31   : > { %v228_v10 = vpack.c.bf16 %v221_v6, %v220_v5  ;;  %v272_v11 = vunpack.c.l.b16 %v230_v4  ;;  %406 = vst [vmem:[#allocation2 + $0x10] sm:$0xff] %v230_v4  ;;  %v273_v12 = vunpack.c.h.b16 %v230_v4  ;;  %v229_v13 = vpack.c.bf16 %v223_v9, %v222_v8  ;;  %v1368_v24 = vld [vmem:[%s2530_s1] sm:$0xff]  ;;  %v1369_v25 = vld [vmem:[%s2530_s1 + $0x8] sm:$0xff]  ;;  %v1370_v29 = vld [vmem:[%s2530_s1 + $0x10] sm:$0xff]  ;;  %s1202_s21 = scalar_lea.hbm %s2533_s4, %s1376_s8  ;;  %s1203_s23 = sshll.u32 %s2471_s14, 4  ;;  %s1204_s23 = int_to_ptr.vmem [resolvable:$true] %s1203_s23 }
  0x32   : > { %v274_v14 = vunpack.c.l.b16 %v231_v7  ;;  %407 = vst [vmem:[#allocation2 + $0x18] sm:$0xff] %v231_v7  ;;  %v275_v15 = vunpack.c.h.b16 %v231_v7  ;;  %v372_v26 = vld [vmem:[%s2531_s2] sm:$0xff]  ;;  %v373_v28 = vld [vmem:[%s2531_s2 + $0x8] sm:$0xff]  ;;  %v1371_v30 = vld [vmem:[%s2530_s1 + $0x18] sm:$0xff]  ;;  %vm410_vm1 = vcmp.eq.s32.totalorder %v409_v42, 0  ;;  %s1205_s24 = sshll.u32 %s1202_s21, 4  ;;  %s1206_s24 = int_to_ptr.hbm [resolvable:$true] %s1205_s24 }
  0x33   : > { %v268_v16 = vunpack.c.l.b16 %v228_v10  ;;  %v269_v17 = vunpack.c.h.b16 %v228_v10  ;;  %v270_v18 = vunpack.c.l.b16 %v229_v13  ;;  %404 = vst [vmem:[#allocation2] sm:$0xff] %v228_v10  ;;  %v271_v19 = vunpack.c.h.b16 %v229_v13  ;;  %378 = vperm.xlu1 %1435, %v372_v26   ;;  %v240_v39 = vld [vmem:[%s2530_s1 + $0x20] sm:$0xf]  ;;  %s1191_s3 = scalar_lea.sflag [#allocation6], %s1796_s7  ;;  %s1622_s26 = sshra.s32 %s1206_s24, 4  ;;  %s1623_s26 = int_to_ptr.hbm [resolvable:$true] %s1622_s26 }
  0x34   : > { %v278_v20 = vpack.c.b16 %v274_v14, %v272_v11  ;;  %v279_v21 = vpack.c.b16 %v275_v15, %v273_v12  ;;  %405 = vst [vmem:[#allocation2 + $0x8] sm:$0xff] %v229_v13  ;;  %v258_v41 = vunpack.c.l.b16 %v240_v39  ;;  %v411_v47 = vsel %vm410_vm1, 1.0, %v1679_v46  ;;  %s1624_s5 = scalar_lea.hbm %s1623_s26, 64  ;;  %s1628_s9 = scalar_lea.hbm %s2533_s4, 128 }
  0x35   : > { %v276_v22 = vpack.c.b16 %v270_v18, %v268_v16  ;;  %v277_v23 = vpack.c.b16 %v271_v19, %v269_v17  ;;  %v412_v50 = vpack.c.bf16 %v411_v47, %v411_v47  ;;  %p1625_p6 = scmp.ne.s32.totalorder %s1623_s26, %s1624_s5  ;;  %p1629_p0 = scmp.lt.s32.totalorder %s1623_s26, %s2533_s4 }
  0x36   : > { %306 = vmatpush.bf16.msra.mxu0 %v278_v20  ;;  %339 = vmatpush.bf16.msra.mxu1 %v279_v21  ;;  %v263_v43 = vpack.c.b16 %v258_v41, %v258_v41  ;;  %p1630_p1 = scmp.lt.s32.totalorder %s1628_s9, %s1624_s5 }
  0x37   : > { %v456_v51 = vunpack.c.l.b16 %v412_v50  ;;  %v457_v52 = vunpack.c.h.b16 %v412_v50  ;;  %p1626_p9 = pnand %p1625_p6, %p1760_p11 }
  0x38   : > { %v1324_v53 = vld [vmem:[#allocation2 + $0x10] sm:$0xf]  ;;  %v1374_v57 = vld [vmem:[#allocation2 + $0x14] sm:$0xf]  ;;  %p1631_p3 = por %p1630_p1, %p1629_p0 }
  0x39   : > { %v462_v54 = vpack.c.b16 %v456_v51, %v456_v51  ;;  %v463_v55 = vpack.c.b16 %v457_v52, %v457_v52  ;;  %v1375_v56 = vld [vmem:[#allocation2 + $0x14] sm:$0xf0]  ;;  %v1326_v58 = vld [vmem:[#allocation2 + $0x18] sm:$0xf0]  ;;  %p1627_p13 = pneg %p1626_p9 }
  0x3a   : > { %307 = vmatpush.bf16.msra.mxu0 %v276_v22  ;;  %340 = vmatpush.bf16.msra.mxu1 %v277_v23  ;;  %v1325_v61 = vor.u32 %v1375_v56, %v1324_v53  ;;  %v1329_v62 = vor.u32 %v1374_v57, %v1326_v58  ;;  %v1316_v63 = vld [vmem:[#allocation2] sm:$0xf]  ;;  %v1372_v1 = vld [vmem:[#allocation2 + $0x4] sm:$0xf] }
  0x3b   : > { %383 = vperm.xlu1 %1435, %v373_v28   ;;  %v519_v59 = vsel %vm517_vm2, %v462_v54, 0  ;;  %v522_v60 = vsel %vm517_vm2, %v463_v55, 0  ;;  %v1373_v0 = vld [vmem:[#allocation2 + $0x4] sm:$0xf0]  ;;  %v1318_v2 = vld [vmem:[#allocation2 + $0x8] sm:$0xf0]  ;;  %p1632_p4 = pnand %p1631_p3, %p1627_p13 }
  0x3c   : > { %1377 = vmatpush.bf16.msra.mxu2 %v519_v59  ;;  %1380 = vmatpush.bf16.msra.mxu3 %v522_v60  ;;  %v1317_v3 = vor.u32 %v1373_v0, %v1316_v63  ;;  %v1321_v4 = vor.u32 %v1372_v1, %v1318_v2 }
  0x3d   : > { %1304 = vmatmul.msk.bf16.vlgmr.msra.gmra.mxu0 %vm284_vm0, %v1368_v24  ;;  %1309 = vmatmul.msk.bf16.vlgmr.msra.gmra.mxu1 %vm284_vm0, %v1368_v24 }
  0x3e   : > { %529 = vmatpush.bf16.msrb.mxu0 %v519_v59  ;;  %618 = vmatpush.bf16.msrb.mxu1 %v522_v60 }
  0x40   : > { %1378 = vmatpush.bf16.msra.mxu2 %v1325_v61  ;;  %1381 = vmatpush.bf16.msra.mxu3 %v1329_v62 }
  0x42   : > { %530 = vmatpush.bf16.msrb.mxu0 %v1325_v61  ;;  %619 = vmatpush.bf16.msrb.mxu1 %v1329_v62 }
  0x44   : > { %1379 = vmatpush.bf16.msra.mxu2 %v1317_v3  ;;  %1382 = vmatpush.bf16.msra.mxu3 %v1321_v4 }
  0x46   : > { %531 = vmatpush.bf16.msrb.mxu0 %v1317_v3  ;;  %620 = vmatpush.bf16.msrb.mxu1 %v1321_v4 }
  0x4d   : > { %1305 = vmatmul.msk.bf16.gmra.mxu0 %vm284_vm0, %v1369_v25  ;;  %1310 = vmatmul.msk.bf16.gmra.mxu1 %vm284_vm0, %v1369_v25 }
  0x5d   : > { %1306 = vmatmul.msk.bf16.gmra.mxu0 %vm284_vm0, %v1370_v29  ;;  %1311 = vmatmul.msk.bf16.gmra.mxu1 %vm284_vm0, %v1370_v29 }
  0x6d   : > { %1307 = vmatmul.msk.bf16.gmra.mxu0 %vm284_vm0, %v1371_v30  ;;  %1312 = vmatmul.msk.bf16.gmra.mxu1 %vm284_vm0, %v1371_v30 }
  0x7d   : > { %1308 = vmatmul.msk.bf16.gmra.mxu0 %vm284_vm0, %v263_v43  ;;  %1313 = vmatmul.msk.bf16.gmra.mxu1 %vm284_vm0, %v263_v43 }
  0xba   : > { %v309_v31 = vpop.f32.mrf.mxu0  ;;  %v342_v32 = vpop.f32.mrf.mxu1 }
  0xc2   : > { %v311_v33 = vpop.f32.mrf.mxu0  ;;  %v344_v34 = vpop.f32.mrf.mxu1 }
  0xc3   : > { %v366_v35 = vpack.c.bf16 %v311_v33, %v309_v31  ;;  %v367_v36 = vpack.c.bf16 %v344_v34, %v342_v32  ;;  %v374_v34 = vld [vmem:[%s2531_s2 + $0x10] sm:$0xff] }
  0xc4   : > { %388 = vperm.xlu2 %1436, %v374_v34  }
  0xc5   : > { %419 = vxpose.binary.xlu0.c.b16.start [1/6] (short) %v367_v36, %v366_v35, 128  ;;  %v375_v35 = vld [vmem:[%s2531_s2 + $0x18] sm:$0xff] }
  0xca   : > { %v314_v37 = vpop.f32.mrf.mxu0  ;;  %v347_v38 = vpop.f32.mrf.mxu1 }
  0xcc   : > { %393 = vperm.xlu2 %1436, %v375_v35  }
  0xd2   : > { %v316_v44 = vpop.f32.mrf.mxu0  ;;  %v349_v45 = vpop.f32.mrf.mxu1 }
  0xd3   : > { %v368_v48 = vpack.c.bf16 %v316_v44, %v314_v37  ;;  %v369_v49 = vpack.c.bf16 %v349_v45, %v347_v38 }
  0xd5   : > { %420 = vxpose.binary.xlu0.c.b16.cont [2/6] (short) %v369_v49, %v368_v48, 128 }
  0xda   : > { %v319_v5 = vpop.f32.mrf.mxu0  ;;  %v352_v6 = vpop.f32.mrf.mxu1 }
  0xdb   : > { %v370_v7 = vpack.c.bf16 %v319_v5, %v319_v5  ;;  %v371_v8 = vpack.c.bf16 %v352_v6, %v352_v6 }
  0xe2   : > { %v1856_v15 = vpop.f32.mrf.mxu0  ;;  %v1858_v16 = vpop.f32.mrf.mxu1 }
  0xe3   : > { %2562 = vst [vmem:[#allocation10_spill] sm:$0xff] %v1856_v15 }
  0xe4   : > { %2563 = vst [vmem:[#allocation11_spill] sm:$0xff] %v1858_v16 }
  0xe5   : > { %421 = vxpose.binary.xlu0.c.b16.end [3/6] (short) %v371_v8, %v370_v7, 128 }
  0xea   : > { %v1862_v19 = vpop.f32.mrf.mxu0  ;;  %v1864_v20 = vpop.f32.mrf.mxu1 }
  0xeb   : > { %2564 = vst [vmem:[#allocation12_spill] sm:$0xff] %v1862_v19 }
  0xec   : > { %2565 = vst [vmem:[#allocation13_spill] sm:$0xff] %v1864_v20 }
  0xf2   : > { %v1868_v22 = vpop.f32.mrf.mxu0  ;;  %v1870_v23 = vpop.f32.mrf.mxu1 }
  0xf3   : > { %2566 = vst [vmem:[#allocation14_spill] sm:$0xff] %v1868_v22 }
  0xf4   : > { %2567 = vst [vmem:[#allocation15_spill] sm:$0xff] %v1870_v23 }
  0xfa   : > { %v1872_v25 = vpop.f32.mrf.mxu0  ;;  %v1874_v26 = vpop.f32.mrf.mxu1 }
  0xfb   : > { %2568 = vst [vmem:[#allocation16_spill] sm:$0xff] %v1872_v25 }
  0xfc   : > { %2569 = vst [vmem:[#allocation17_spill] sm:$0xff] %v1874_v26 }
 0x102   : > { %v331_v28 = vpop.f32.mrf.mxu0  ;;  %v364_v29 = vpop.f32.mrf.mxu1 }
 0x14c   : > { %1437 = vset.pattern.permute.xlu0 %v1678_v27 }
 0x171   : > { %v427_v9 = vpop.trf.xlu0 }
 0x172   : > { %1330 = vmatmul.msk.bf16.vlgmr.msrb.gmra.mxu0 %vm468_vm3, %v427_v9  ;;  %1346 = vmatmul.msk.bf16.vlgmr.msrb.gmra.mxu1 %vm468_vm3, %v427_v9 }
 0x179   : > { %v428_v10 = vpop.trf.xlu0 }
 0x181   : > { %v429_v11 = vpop.trf.xlu0 }
 0x182   : > { %1331 = vmatmul.msk.bf16.gmra.mxu0 %vm468_vm3, %v429_v11  ;;  %1347 = vmatmul.msk.bf16.gmra.mxu1 %vm468_vm3, %v429_v11 }
 0x189   : > { %v430_v12 = vpop.trf.xlu0 }
 0x191   : > { %v431_v13 = vpop.trf.xlu0 }
 0x192   : > { %1332 = vmatmul.msk.bf16.gmra.mxu0 %vm468_vm3, %v431_v13  ;;  %1348 = vmatmul.msk.bf16.gmra.mxu1 %vm468_vm3, %v431_v13 }
 0x199   : > { %v432_v14 = vpop.trf.xlu0 }
 0x1a1   : > { %v433_v17 = vpop.trf.xlu0 }
 0x1a2   : > { %1333 = vmatmul.msk.bf16.vlgmr.msra.gmra.mxu2 %vm468_vm3, %v433_v17  ;;  %1349 = vmatmul.msk.bf16.vlgmr.msra.gmra.mxu3 %vm468_vm3, %v433_v17 }
 0x1a9   : > { %v434_v18 = vpop.trf.xlu0 }
 0x1b1   : > { %v435_v21 = vpop.trf.xlu0 }
 0x1b2   : > { %1334 = vmatmul.msk.bf16.gmra.mxu2 %vm468_vm3, %v435_v21  ;;  %1350 = vmatmul.msk.bf16.gmra.mxu3 %vm468_vm3, %v435_v21 }
 0x1b9   : > { %v436_v24 = vpop.trf.xlu0 }
 0x1c1   : > { %v437_v27 = vpop.trf.xlu0 }
 0x1c2   : > { %1335 = vmatmul.msk.bf16.gmra.mxu2 %vm468_vm3, %v437_v27  ;;  %1351 = vmatmul.msk.bf16.gmra.mxu3 %vm468_vm3, %v437_v27 }
 0x1c9   : > { %v438_v30 = vpop.trf.xlu0 }
 0x1d1   : > { %v439_v31 = vpop.trf.xlu0 }
 0x1d2   : > { %1336 = vmatmul.msk.bf16.gmra.mxu2 %vm468_vm3, %v439_v31  ;;  %1352 = vmatmul.msk.bf16.gmra.mxu3 %vm468_vm3, %v439_v31 }
 0x1d9   : > { %v440_v32 = vpop.trf.xlu0 }
 0x1e1   : > { %v441_v33 = vpop.trf.xlu0 }
 0x1e2   : > { %1337 = vmatmul.msk.bf16.gmra.mxu2 %vm468_vm3, %v441_v33  ;;  %1353 = vmatmul.msk.bf16.gmra.mxu3 %vm468_vm3, %v441_v33 }
 0x1e9   : > { %v442_v52 = vpop.trf.xlu0 }
 0x1ef   : > { %v1968_v5 = vpop.f32.mrf.mxu0  ;;  %v1980_v11 = vpop.f32.mrf.mxu1 }
 0x1f2   : > { %1338 = vmatmul.msk.bf16.gmra.mxu2 %vm468_vm3, %v428_v10  ;;  %1354 = vmatmul.msk.bf16.gmra.mxu3 %vm468_vm3, %v428_v10 }
 0x1f7   : > { %v1974_v8 = vpop.f32.mrf.mxu0  ;;  %v1988_v17 = vpop.f32.mrf.mxu1 }
 0x1f8   : > { %2581 = vst [vmem:[#allocation29_spill] sm:$0xff] %v1988_v17 }
 0x1ff   : > { %v1996_v27 = vpop.f32.mrf.mxu1 }
 0x200   : > { %2584 = vst [vmem:[#allocation32_spill] sm:$0xff] %v1996_v27 }
 0x202   : > { %1339 = vmatmul.msk.bf16.gmra.mxu2 %vm468_vm3, %v430_v12  ;;  %1355 = vmatmul.msk.bf16.gmra.mxu3 %vm468_vm3, %v430_v12  ;;  %v1982_v12 = vpop.f32.mrf.mxu0 }
 0x203   : > { %v702_v34 = vmax.f32 %v1968_v5, %v1982_v12 }
 0x212   : > { %1340 = vmatmul.msk.bf16.gmra.mxu2 %vm468_vm3, %v432_v14  ;;  %1356 = vmatmul.msk.bf16.gmra.mxu3 %vm468_vm3, %v432_v14 }
 0x222   : > { %1341 = vmatmul.msk.bf16.gmra.mxu2 %vm468_vm3, %v434_v18  ;;  %1357 = vmatmul.msk.bf16.gmra.mxu3 %vm468_vm3, %v434_v18  ;;  %v1990_v18 = vpop.f32.mrf.mxu0 }
 0x223   : > { %2582 = vst [vmem:[#allocation30_spill] sm:$0xff] %v1990_v18  ;;  %v703_v35 = vmax.f32 %v1974_v8, %v1990_v18 }
 0x225   : > { %v1896_v36 = vpop.f32.mrf.mxu2  ;;  %v1898_v37 = vpop.f32.mrf.mxu3 }
 0x22a   : > { %v2000_v29 = vpop.f32.mrf.mxu0 }
 0x22b   : > { %2585 = vst [vmem:[#allocation33_spill] sm:$0xff] %v2000_v29 }
 0x22d   : > { %v1900_v38 = vpop.f32.mrf.mxu2  ;;  %v1902_v39 = vpop.f32.mrf.mxu3 }
 0x22e   : > { %2570 = vst [vmem:[#allocation18_spill] sm:$0xff] %v1900_v38 }
 0x22f   : > { %2571 = vst [vmem:[#allocation19_spill] sm:$0xff] %v1902_v39 }
 0x232   : > { %1342 = vmatmul.msk.bf16.gmra.mxu2 %vm468_vm3, %v436_v24  ;;  %1358 = vmatmul.msk.bf16.gmra.mxu3 %vm468_vm3, %v436_v24  ;;  %v2008_v33 = vpop.f32.mrf.mxu0 }
 0x233   : > { %2587 = vst [vmem:[#allocation35_spill] sm:$0xff] %v2008_v33  ;;  %v705_v26 = vmax.f32 %v703_v35, %v2008_v33 }
 0x235   : > { %v1906_v40 = vpop.f32.mrf.mxu2  ;;  %v1908_v41 = vpop.f32.mrf.mxu3  ;;  %v707_v20 = vmax.f32 %v705_v26, %v1900_v38 }
 0x23d   : > { %v1910_v42 = vpop.f32.mrf.mxu2  ;;  %v1912_v43 = vpop.f32.mrf.mxu3 }
 0x23e   : > { %2572 = vst [vmem:[#allocation20_spill] sm:$0xff] %v1912_v43  ;;  %v709_v16 = vmax.f32 %v707_v20, %v1910_v42 }
 0x242   : > { %1343 = vmatmul.msk.bf16.gmra.mxu2 %vm468_vm3, %v438_v30  ;;  %1359 = vmatmul.msk.bf16.gmra.mxu3 %vm468_vm3, %v438_v30 }
 0x245   : > { %v1916_v44 = vpop.f32.mrf.mxu2  ;;  %v1918_v45 = vpop.f32.mrf.mxu3 }
 0x24d   : > { %v1920_v46 = vpop.f32.mrf.mxu2  ;;  %v1922_v47 = vpop.f32.mrf.mxu3 }
 0x24e   : > { %2573 = vst [vmem:[#allocation21_spill] sm:$0xff] %v1920_v46 }
 0x24f   : > { %2574 = vst [vmem:[#allocation22_spill] sm:$0xff] %v1922_v47 }
 0x252   : > { %1344 = vmatmul.msk.bf16.gmra.mxu2 %vm468_vm3, %v440_v32  ;;  %1360 = vmatmul.msk.bf16.gmra.mxu3 %vm468_vm3, %v440_v32  ;;  %v2006_v32 = vpop.f32.mrf.mxu1 }
 0x253   : > { %2586 = vst [vmem:[#allocation34_spill] sm:$0xff] %v2006_v32 }
 0x255   : > { %v1926_v48 = vpop.f32.mrf.mxu2  ;;  %v1928_v49 = vpop.f32.mrf.mxu3 }
 0x25a   : > { %v2024_v15 = vpop.f32.mrf.mxu1 }
 0x25d   : > { %v1930_v50 = vpop.f32.mrf.mxu2  ;;  %v1932_v51 = vpop.f32.mrf.mxu3 }
 0x25e   : > { %2575 = vst [vmem:[#allocation23_spill] sm:$0xff] %v1932_v51 }
 0x262   : > { %1345 = vmatmul.msk.bf16.gmra.mxu2 %vm468_vm3, %v442_v52  ;;  %1361 = vmatmul.msk.bf16.gmra.mxu3 %vm468_vm3, %v442_v52  ;;  %v704_v52 = vmax.f32 %v702_v34, %v2000_v29  ;;  %v711_v34 = vmax.f32 %v709_v16, %v1920_v46  ;;  %v2040_v46 = vpop.f32.mrf.mxu1 }
 0x264   : > { %v706_v22 = vmax.f32 %v704_v52, %v1896_v36  ;;  %v713_v33 = vmax.f32 %v711_v34, %v1930_v50 }
 0x265   : > { %v1936_v53 = vpop.f32.mrf.mxu2  ;;  %v1938_v54 = vpop.f32.mrf.mxu3 }
 0x266   : > { %v708_v19 = vmax.f32 %v706_v22, %v1906_v40 }
 0x268   : > { %v710_v18 = vmax.f32 %v708_v19, %v1916_v44 }
 0x26a   : > { %v712_v35 = vmax.f32 %v710_v18, %v1926_v48  ;;  %v740_v18 = vmax.f32 %v1988_v17, %v2006_v32 }
 0x26c   : > { %v714_v52 = vmax.f32 %v712_v35, %v1936_v53 }
 0x26d   : > { %v1940_v55 = vpop.f32.mrf.mxu2  ;;  %v1942_v56 = vpop.f32.mrf.mxu3 }
 0x26e   : > { %v715_v26 = vmax.f32 %v713_v33, %v1940_v55 }
 0x275   : > { %v1944_v57 = vpop.f32.mrf.mxu2  ;;  %v1946_v58 = vpop.f32.mrf.mxu3 }
 0x276   : > { %v716_v20 = vmax.f32 %v714_v52, %v1944_v57  ;;  %v739_v52 = vmax.f32 %v1980_v11, %v1996_v27 }
 0x27d   : > { %v1948_v59 = vpop.f32.mrf.mxu2  ;;  %v1950_v60 = vpop.f32.mrf.mxu3 }
 0x27e   : > { %2576 = vst [vmem:[#allocation24_spill] sm:$0xff] %v1950_v60  ;;  %v717_v22 = vmax.f32 %v715_v26, %v1948_v59  ;;  %v742_v26 = vmax.f32 %v740_v18, %v2040_v46 }
 0x285   : > { %v1952_v61 = vpop.f32.mrf.mxu2  ;;  %v1954_v62 = vpop.f32.mrf.mxu3 }
 0x286   : > { %2577 = vst [vmem:[#allocation25_spill] sm:$0xff] %v1952_v61  ;;  %v718_v19 = vmax.f32 %v716_v20, %v1952_v61  ;;  %v744_v61 = vmax.f32 %v742_v26, %v1902_v39 }
 0x288   : > { %v746_v27 = vmax.f32 %v744_v61, %v1912_v43 }
 0x28d   : > { %v1956_v63 = vpop.f32.mrf.mxu2  ;;  %v1958_v0 = vpop.f32.mrf.mxu3 }
 0x28e   : > { %2578 = vst [vmem:[#allocation26_spill] sm:$0xff] %v1956_v63  ;;  %v719_v16 = vmax.f32 %v717_v22, %v1956_v63  ;;  %v741_v63 = vmax.f32 %v739_v52, %v2024_v15  ;;  %v748_v52 = vmax.f32 %v746_v27, %v1922_v47 }
 0x290   : > { %v743_v17 = vmax.f32 %v741_v63, %v1898_v37  ;;  %v750_v63 = vmax.f32 %v748_v52, %v1932_v51 }
 0x295   : > { %v1960_v1 = vpop.f32.mrf.mxu2  ;;  %v1962_v2 = vpop.f32.mrf.mxu3 }
 0x296   : > { %v720_v34 = vmax.f32 %v718_v19, %v1960_v1 }
 0x29d   : > { %v1964_v3 = vpop.f32.mrf.mxu2  ;;  %v1966_v4 = vpop.f32.mrf.mxu3 }
 0x29e   : > { %v721_v35 = vmax.f32 %v719_v16, %v1964_v3 }
 0x2a5   : > { %v1970_v6 = vpop.f32.mrf.mxu2  ;;  %v1972_v7 = vpop.f32.mrf.mxu3 }
 0x2a6   : > { %v722_v20 = vmax.f32 %v720_v34, %v1970_v6 }
 0x2ad   : > { %v1976_v9 = vpop.f32.mrf.mxu2  ;;  %v1978_v10 = vpop.f32.mrf.mxu3 }
 0x2ae   : > { %2579 = vst [vmem:[#allocation27_spill] sm:$0xff] %v1978_v10  ;;  %v723_v22 = vmax.f32 %v721_v35, %v1976_v9  ;;  %v745_v35 = vmax.f32 %v743_v17, %v1908_v41  ;;  %v752_v17 = vmax.f32 %v750_v63, %v1942_v56 }
 0x2b5   : > { %v1984_v13 = vpop.f32.mrf.mxu2  ;;  %v1986_v14 = vpop.f32.mrf.mxu3 }
 0x2b6   : > { %2580 = vst [vmem:[#allocation28_spill] sm:$0xff] %v1986_v14  ;;  %v724_v32 = vmax.f32 %v722_v20, %v1984_v13 }
 0x2bd   : > { %v1992_v21 = vpop.f32.mrf.mxu2  ;;  %v1994_v24 = vpop.f32.mrf.mxu3 }
 0x2be   : > { %2583 = vst [vmem:[#allocation31_spill] sm:$0xff] %v1994_v24  ;;  %v725_v19 = vmax.f32 %v723_v22, %v1992_v21  ;;  %v747_v22 = vmax.f32 %v745_v35, %v1918_v45 }
 0x2c5   : > { %v1998_v28 = vpop.f32.mrf.mxu2  ;;  %v2002_v30 = vpop.f32.mrf.mxu3 }
 0x2c6   : > { %v726_v18 = vmax.f32 %v724_v32, %v1998_v28 }
 0x2cd   : > { %v2004_v31 = vpop.f32.mrf.mxu2  ;;  %v2016_v23 = vpop.f32.mrf.mxu3 }
 0x2ce   : > { %v727_v34 = vmax.f32 %v725_v19, %v2004_v31  ;;  %v749_v19 = vmax.f32 %v747_v22, %v1928_v49 }
 0x2d0   : > { %v751_v27 = vmax.f32 %v749_v19, %v1938_v54 }
 0x2d2   : > { %v753_v35 = vmax.f32 %v751_v27, %v1946_v58 }
 0x2d5   : > { %v2018_v25 = vpop.f32.mrf.mxu2  ;;  %v2034_v38 = vpop.f32.mrf.mxu3 }
 0x2d6   : > { %v728_v26 = vmax.f32 %v726_v18, %v2018_v25  ;;  %v754_v18 = vmax.f32 %v752_v17, %v1950_v60 }
 0x2d8   : > { %v756_v52 = vmax.f32 %v754_v18, %v1958_v0 }
 0x2dd   : > { %v2030_v29 = vpop.f32.mrf.mxu2  ;;  %v2057_v16 = vpop.f32.mrf.mxu3 }
 0x2de   : > { %v729_v20 = vmax.f32 %v727_v34, %v2030_v29 }
 0x2e5   : > { %v2046_v33 = vpop.f32.mrf.mxu2  ;;  %v2077_v47 = vpop.f32.mrf.mxu3 }
 0x2e6   : > { %v730_v61 = vmax.f32 %v728_v26, %v2046_v33  ;;  %v755_v26 = vmax.f32 %v753_v35, %v1954_v62 }
 0x2e8   : > { %v757_v63 = vmax.f32 %v755_v26, %v1962_v2 }
 0x2ea   : > { %v759_v19 = vmax.f32 %v757_v63, %v1972_v7 }
 0x2ec   : > { %v761_v27 = vmax.f32 %v759_v19, %v1986_v14 }
 0x2ed   : > { %v2067_v39 = vpop.f32.mrf.mxu2 }
 0x2ee   : > { %v731_v32 = vmax.f32 %v729_v20, %v2067_v39  ;;  %v758_v20 = vmax.f32 %v756_v52, %v1966_v4 }
 0x2f0   : > { %v732_v43 = vmax.f32 %v730_v61, %v731_v32  ;;  %v760_v61 = vmax.f32 %v758_v20, %v1978_v10 }
 0x2f2   : > { %v733_v34 = vrot.slane %v732_v43, 4  ;;  %v762_v17 = vmax.f32 %v760_v61, %v1994_v24 }
 0x2f4   : > { %v734_v51 = vmax.f32 %v732_v43, %v733_v34  ;;  %v764_v18 = vmax.f32 %v762_v17, %v2016_v23  ;;  %v2089_v43 = vpop.f32.mrf.mxu3  ;;  %v763_v34 = vmax.f32 %v761_v27, %v2002_v30  ;;  %v2588_v17 = vld [vmem:[#allocation30_spill] sm:$0xff] }
 0x2f6   : > { %v735_v22 = vrot.slane %v734_v51, 2  ;;  %v766_v35 = vmax.f32 %v764_v18, %v2057_v16  ;;  %v765_v26 = vmax.f32 %v763_v34, %v2034_v38  ;;  %v2589_v18 = vld [vmem:[#allocation33_spill] sm:$0xff] }
 0x2f8   : > { %v736_v32 = vmax.f32 %v734_v51, %v735_v22  ;;  %v768_v51 = vmax.f32 %v766_v35, %v2089_v43  ;;  %v767_v20 = vmax.f32 %v765_v26, %v2077_v47 }
 0x2fa   : > { %v737_v60 = vrot.slane %v736_v32, 1  ;;  %v769_v19 = vmax.f32 %v767_v20, %v768_v51 }
 0x2fc   : > { %v2093_v52 = vmax.f32 %v736_v32, %v737_v60  ;;  %v770_v26 = vrot.slane %v769_v19, 4 }
 0x2fe   : > { %v776_v22 = vsub.f32 %v1968_v5, %v2093_v52  ;;  %v778_v63 = vsub.f32 %v1974_v8, %v2093_v52  ;;  %v780_v61 = vsub.f32 %v1982_v12, %v2093_v52  ;;  %v782_v60 = vsub.f32 %v2588_v17, %v2093_v52  ;;  %v2590_v5 = vld [vmem:[#allocation35_spill] sm:$0xff] }
 0x2ff   : > { %v784_v34 = vsub.f32 %v2589_v18, %v2093_v52  ;;  %v786_v10 = vsub.f32 %v2590_v5, %v2093_v52  ;;  %v788_v12 = vsub.f32 %v1896_v36, %v2093_v52  ;;  %v771_v20 = vmax.f32 %v769_v19, %v770_v26 }
 0x300   : > { %v840_v32 = vmul.f32 1.442695, %v776_v22  ;;  %v844_v27 = vmul.f32 1.442695, %v778_v63  ;;  %v848_v35 = vmul.f32 1.442695, %v780_v61  ;;  %v792_v61 = vsub.f32 %v1906_v40, %v2093_v52 }
 0x301   : > { %v852_v8 = vmul.f32 1.442695, %v782_v60  ;;  %v856_v51 = vmul.f32 1.442695, %v784_v34  ;;  %v2591_v22 = vld [vmem:[#allocation18_spill] sm:$0xff]  ;;  %v794_v60 = vsub.f32 %v1910_v42, %v2093_v52  ;;  %v796_v19 = vsub.f32 %v1916_v44, %v2093_v52 }
 0x302   : > { %1438 = vpow2.f32 %v840_v32  ;;  %v790_v63 = vsub.f32 %v2591_v22, %v2093_v52  ;;  %v860_v17 = vmul.f32 1.442695, %v786_v10  ;;  %v864_v36 = vmul.f32 1.442695, %v788_v12 }
 0x303   : > { %1440 = vpow2.f32 %v844_v27  ;;  %v772_v34 = vrot.slane %v771_v20, 2  ;;  %v800_v5 = vsub.f32 %v1926_v48, %v2093_v52  ;;  %v872_v42 = vmul.f32 1.442695, %v792_v61 }
 0x304   : > { %1442 = vpow2.f32 %v848_v35  ;;  %v2594_v35 = vld [vmem:[#allocation21_spill] sm:$0xff]  ;;  %v868_v40 = vmul.f32 1.442695, %v790_v63  ;;  %v802_v44 = vsub.f32 %v1930_v50, %v2093_v52  ;;  %v804_v22 = vsub.f32 %v1936_v53, %v2093_v52 }
 0x305   : > { %1444 = vpow2.f32 %v852_v8  ;;  %v798_v26 = vsub.f32 %v2594_v35, %v2093_v52  ;;  %v773_v63 = vmax.f32 %v771_v20, %v772_v34  ;;  %v806_v48 = vsub.f32 %v1940_v55, %v2093_v52  ;;  %v2595_v20 = vld [vmem:[#allocation25_spill] sm:$0xff] }
 0x306   : > { %1446 = vpow2.f32 %v856_v51  ;;  %v876_v51 = vmul.f32 1.442695, %v794_v60  ;;  %v888_v50 = vmul.f32 1.442695, %v800_v5  ;;  %v810_v53 = vsub.f32 %v1948_v59, %v2093_v52  ;;  %v2596_v5 = vld [vmem:[#allocation26_spill] sm:$0xff] }
 0x307   : > { %1448 = vpow2.f32 %v860_v17  ;;  %v884_v61 = vmul.f32 1.442695, %v798_v26  ;;  %v892_v34 = vmul.f32 1.442695, %v802_v44  ;;  %v896_v55 = vmul.f32 1.442695, %v804_v22 }
 0x308   : > { %v2114_v18 = vpop.eup %1438  ;;  %1450 = vpow2.f32 %v864_v36  ;;  %v816_v59 = vsub.f32 %v1960_v1, %v2093_v52  ;;  %v820_v22 = vsub.f32 %v1970_v6, %v2093_v52  ;;  %v836_v6 = vsub.f32 %v2046_v33, %v2093_v52 }
 0x309   : > { %2592 = vst [vmem:[#allocation30_spill] sm:$0xff] %v2114_v18  ;;  %v2118_v32 = vpop.eup %1440  ;;  %1452 = vpow2.f32 %v868_v40  ;;  %v774_v40 = vrot.slane %v773_v63, 1 }
 0x30a   : > { %2593 = vst [vmem:[#allocation33_spill] sm:$0xff] %v2118_v32  ;;  %v968_v27 = vadd.f32 %v2118_v32, %v2114_v18  ;;  %v2126_v10 = vpop.eup %1442  ;;  %v880_v32 = vmul.f32 1.442695, %v796_v19  ;;  %1454 = vpow2.f32 %v872_v42  ;;  %v812_v19 = vsub.f32 %v2595_v20, %v2093_v52 }
 0x30b   : > { %v2133_v12 = vpop.eup %1444  ;;  %1456 = vpow2.f32 %v876_v51  ;;  %v814_v42 = vsub.f32 %v2596_v5, %v2093_v52 }
 0x30c   : > { %v969_v8 = vadd.f32 %v2126_v10, %v968_v27  ;;  %v2140_v35 = vpop.eup %1446  ;;  %v808_v27 = vsub.f32 %v1944_v57, %v2093_v52  ;;  %1458 = vpow2.f32 %v880_v32  ;;  %v818_v32 = vsub.f32 %v1964_v3, %v2093_v52 }
 0x30d   : > { %v2147_v36 = vpop.eup %1448  ;;  %1460 = vpow2.f32 %v884_v61  ;;  %v2170_v61 = vmax.f32 %v773_v63, %v774_v40  ;;  %v916_v3 = vmul.f32 1.442695, %v814_v42  ;;  %v838_v63 = vsub.f32 %v2067_v39, %v2093_v52 }
 0x30e   : > { %v970_v17 = vadd.f32 %v2133_v12, %v969_v8  ;;  %v2154_v57 = vpop.eup %1450  ;;  %v900_v8 = vmul.f32 1.442695, %v806_v48  ;;  %1462 = vpow2.f32 %v888_v50  ;;  %v912_v48 = vmul.f32 1.442695, %v812_v19 }
 0x30f   : > { %v2161_v44 = vpop.eup %1452  ;;  %1464 = vpow2.f32 %v892_v34  ;;  %v832_v50 = vsub.f32 %v2018_v25, %v2093_v52  ;;  %v928_v25 = vmul.f32 1.442695, %v820_v22  ;;  %v777_v33 = vsub.f32 %v1980_v11, %v2170_v61 }
 0x310   : > { %v971_v60 = vadd.f32 %v2140_v35, %v970_v17  ;;  %v904_v17 = vmul.f32 1.442695, %v808_v27  ;;  %v2167_v20 = vpop.eup %1454  ;;  %1466 = vpow2.f32 %v896_v55  ;;  %v924_v55 = vmul.f32 1.442695, %v818_v32 }
 0x311   : > { %v2172_v27 = vpop.eup %1456  ;;  %1468 = vpow2.f32 %v900_v8  ;;  %v952_v8 = vmul.f32 1.442695, %v832_v50  ;;  %v834_v39 = vsub.f32 %v2030_v29, %v2093_v52  ;;  %v960_v32 = vmul.f32 1.442695, %v836_v6  ;;  %v2599_v6 = vld [vmem:[#allocation34_spill] sm:$0xff] }
 0x312   : > { %v972_v26 = vadd.f32 %v2147_v36, %v971_v60  ;;  %v908_v60 = vmul.f32 1.442695, %v810_v53  ;;  %1470 = vpow2.f32 %v904_v17  ;;  %v920_v53 = vmul.f32 1.442695, %v816_v59  ;;  %v2597_v59 = vld [vmem:[#allocation29_spill] sm:$0xff] }
 0x313   : > { %v779_v17 = vsub.f32 %v2597_v59, %v2170_v61  ;;  %v964_v11 = vmul.f32 1.442695, %v838_v63  ;;  %v842_v29 = vmul.f32 1.442695, %v777_v33  ;;  %v830_v59 = vsub.f32 %v2004_v31, %v2093_v52 }
 0x314   : > { %v973_v51 = vadd.f32 %v2154_v57, %v972_v26  ;;  %v2176_v26 = vpop.eup %1458  ;;  %1472 = vpow2.f32 %v908_v60  ;;  %v785_v33 = vsub.f32 %v2024_v15, %v2170_v61  ;;  %v826_v15 = vsub.f32 %v1992_v21, %v2093_v52 }
 0x315   : > { %v2181_v34 = vpop.eup %1460  ;;  %1474 = vpow2.f32 %v912_v48  ;;  %v2598_v48 = vld [vmem:[#allocation32_spill] sm:$0xff] }
 0x316   : > { %v974_v1 = vadd.f32 %v2161_v44, %v973_v51  ;;  %v2185_v40 = vpop.eup %1462  ;;  %1476 = vpow2.f32 %v916_v3  ;;  %v828_v3 = vsub.f32 %v1998_v28, %v2093_v52 }
 0x317   : > { %v2190_v42 = vpop.eup %1464  ;;  %1478 = vpow2.f32 %v920_v53 }
 0x318   : > { %v975_v19 = vadd.f32 %v2167_v20, %v974_v1  ;;  %v2194_v51 = vpop.eup %1466  ;;  %1480 = vpow2.f32 %v924_v55  ;;  %v781_v1 = vsub.f32 %v2598_v48, %v2170_v61  ;;  %v846_v55 = vmul.f32 1.442695, %v779_v17 }
 0x319   : > { %v2199_v60 = vpop.eup %1468  ;;  %1482 = vpow2.f32 %v928_v25  ;;  %v956_v48 = vmul.f32 1.442695, %v834_v39  ;;  %v824_v17 = vsub.f32 %v1984_v13, %v2093_v52 }
 0x31a   : > { %v976_v5 = vadd.f32 %v2172_v27, %v975_v19  ;;  %v2203_v50 = vpop.eup %1470  ;;  %1484 = vpow2.f32 %v952_v8  ;;  %v850_v8 = vmul.f32 1.442695, %v781_v1  ;;  %v948_v1 = vmul.f32 1.442695, %v830_v59  ;;  %v2600_v59 = vld [vmem:[#allocation10_spill] sm:$0xff] }
 0x31b   : > { %v2208_v53 = vpop.eup %1472  ;;  %1486 = vpow2.f32 %v960_v32  ;;  %v787_v32 = vsub.f32 %v2040_v46, %v2170_v61  ;;  %v822_v46 = vsub.f32 %v1976_v9, %v2093_v52  ;;  %v1062_v52 = vpack.c.bf16 %v2199_v60, %v2194_v51 }
 0x31c   : > { %v977_v22 = vadd.f32 %v2176_v26, %v976_v5  ;;  %v783_v5 = vsub.f32 %v2599_v6, %v2170_v61  ;;  %v2212_v63 = vpop.eup %1474  ;;  %1488 = vpow2.f32 %v964_v11  ;;  %v944_v6 = vmul.f32 1.442695, %v828_v3 }
 0x31d   : > { %v2217_v25 = vpop.eup %1476  ;;  %1490 = vpow2.f32 %v842_v29  ;;  %v789_v29 = vsub.f32 %v1898_v37, %v2170_v61  ;;  %v862_v37 = vmul.f32 1.442695, %v787_v32  ;;  %1080 = vmatpush.bf16.msra.mxu0 %v1062_v52  ;;  %v1060_v52 = vpack.c.bf16 %v2190_v42, %v2185_v40 }
 0x31e   : > { %v978_v19 = vadd.f32 %v2181_v34, %v977_v22  ;;  %v379_v22 = vpop.permute.xlu1 %378  ;;  %v2221_v18 = vpop.eup %1478  ;;  %1492 = vpow2.f32 %v846_v55  ;;  %v854_v11 = vmul.f32 1.442695, %v783_v5  ;;  %v936_v5 = vmul.f32 1.442695, %v824_v17 }
 0x31f   : > { %v2226_v39 = vpop.eup %1480  ;;  %1494 = vpow2.f32 %v956_v48  ;;  %v2247_v48 = vadd.f32 %v379_v22, %v2600_v59  ;;  %v932_v59 = vmul.f32 1.442695, %v822_v46 }
 0x320   : > { %v979_v28 = vadd.f32 %v2185_v40, %v978_v19  ;;  %v2230_v19 = vpop.eup %1482  ;;  %1496 = vpow2.f32 %v850_v8  ;;  %v940_v8 = vmul.f32 1.442695, %v826_v15 }
 0x321   : > { %v2235_v3 = vpop.eup %1484  ;;  %1498 = vpow2.f32 %v944_v6  ;;  %v793_v6 = vsub.f32 %v1908_v41, %v2170_v61  ;;  %1081 = vmatpush.bf16.msra.mxu0 %v1060_v52 }
 0x322   : > { %v980_v31 = vadd.f32 %v2190_v42, %v979_v28  ;;  %v858_v28 = vmul.f32 1.442695, %v785_v33  ;;  %v2239_v24 = vpop.eup %1486  ;;  %1500 = vpow2.f32 %v854_v11 }
 0x323   : > { %v2244_v55 = vpop.eup %1488  ;;  %1502 = vpow2.f32 %v948_v1 }
 0x324   : > { %v981_v13 = vadd.f32 %v2194_v51, %v980_v31  ;;  %v2601_v31 = vld [vmem:[#allocation19_spill] sm:$0xff]  ;;  %v2251_v33 = vpop.eup %1490  ;;  %1504 = vpow2.f32 %v858_v28  ;;  %v1078_v11 = vpack.c.bf16 %v2244_v55, %v2239_v24 }
 0x325   : > { %v791_v14 = vsub.f32 %v2601_v31, %v2170_v61  ;;  %2602 = vst [vmem:[#allocation35_spill] sm:$0xff] %v2251_v33  ;;  %v2256_v17 = vpop.eup %1492  ;;  %1506 = vpow2.f32 %v936_v5 }
 0x326   : > { %v982_v21 = vadd.f32 %v2199_v60, %v981_v13  ;;  %2603 = vst [vmem:[#allocation18_spill] sm:$0xff] %v2256_v17  ;;  %v866_v13 = vmul.f32 1.442695, %v789_v29  ;;  %v2262_v32 = vpop.eup %1494  ;;  %v1005_v1 = vadd.f32 %v2256_v17, %v2251_v33  ;;  %v2604_v60 = vld [vmem:[#allocation11_spill] sm:$0xff]  ;;  %v384_v41 = vpop.permute.xlu1 %383  ;;  %v2605_v29 = vld [vmem:[#allocation20_spill] sm:$0xff]  ;;  %1508 = vpow2.f32 %v862_v37  ;;  %1099 = vmatpush.bf16.msra.mxu1 %v1078_v11 }
 0x327   : > { %v2267_v51 = vpop.eup %1496  ;;  %v795_v28 = vsub.f32 %v2605_v29, %v2170_v61  ;;  %v870_v31 = vmul.f32 1.442695, %v791_v14  ;;  %1510 = vpow2.f32 %v940_v8  ;;  %v1076_v14 = vpack.c.bf16 %v2262_v32, %v2235_v3  ;;  %v2607_v8 = vld [vmem:[#allocation12_spill] sm:$0xff] }
 0x328   : > { %v983_v9 = vadd.f32 %v2203_v50, %v982_v21  ;;  %v2270_v21 = vadd.f32 %v379_v22, %v2604_v60  ;;  %v2274_v46 = vpop.eup %1498  ;;  %v797_v22 = vsub.f32 %v1918_v45, %v2170_v61  ;;  %1512 = vpow2.f32 %v866_v13 }
 0x329   : > { %v2280_v17 = vpop.eup %1500  ;;  %v874_v60 = vmul.f32 1.442695, %v793_v6  ;;  %v2289_v11 = vadd.f32 %v384_v41, %v2607_v8  ;;  %1514 = vpow2.f32 %v932_v59  ;;  %v2609_v6 = vld [vmem:[#allocation22_spill] sm:$0xff]  ;;  %v878_v29 = vmul.f32 1.442695, %v795_v28 }
 0x32a   : > { %v984_v15 = vadd.f32 %v2208_v53, %v983_v9  ;;  %v1006_v9 = vadd.f32 %v2267_v51, %v1005_v1  ;;  %2606 = vst [vmem:[#allocation21_spill] sm:$0xff] %v2280_v17  ;;  %v2286_v37 = vpop.eup %1502  ;;  %v2608_v1 = vld [vmem:[#allocation13_spill] sm:$0xff]  ;;  %v799_v13 = vsub.f32 %v2609_v6, %v2170_v61  ;;  %1516 = vpow2.f32 %v870_v31  ;;  %1100 = vmatpush.bf16.msra.mxu1 %v1076_v14 }
 0x32b   : > { %v2293_v42 = vpop.eup %1504  ;;  %v2296_v45 = vadd.f32 %v384_v41, %v2608_v1  ;;  %v801_v59 = vsub.f32 %v1928_v49, %v2170_v61  ;;  %v2610_v41 = vld [vmem:[#allocation23_spill] sm:$0xff]  ;;  %1518 = vpow2.f32 %v874_v60  ;;  %v882_v31 = vmul.f32 1.442695, %v797_v22  ;;  %v2611_v60 = vld [vmem:[#allocation24_spill] sm:$0xff] }
 0x32c   : > { %v985_v5 = vadd.f32 %v2212_v63, %v984_v15  ;;  %v1007_v40 = vadd.f32 %v2280_v17, %v1006_v9  ;;  %v1507_v33 = vpop.eup %1506  ;;  %v1058_v9 = vpack.c.bf16 %v2181_v34, %v2176_v26  ;;  %v803_v1 = vsub.f32 %v2610_v41, %v2170_v61 }
 0x32d   : > { %v2306_v52 = vpop.eup %1508  ;;  %v1074_v28 = vpack.c.bf16 %v2286_v37, %v2274_v46  ;;  %v805_v49 = vsub.f32 %v1938_v54, %v2170_v61  ;;  %v809_v22 = vsub.f32 %v1946_v58, %v2170_v61  ;;  %v811_v6 = vsub.f32 %v2611_v60, %v2170_v61 }
 0x32e   : > { %v986_v15 = vadd.f32 %v2217_v25, %v985_v5  ;;  %v1008_v5 = vadd.f32 %v2293_v42, %v1007_v40  ;;  %v1511_v14 = vpop.eup %1510  ;;  %v807_v40 = vsub.f32 %v1942_v56, %v2170_v61  ;;  %1082 = vmatpush.bf16.msra.mxu0 %v1058_v9  ;;  %1520 = vpow2.f32 %v878_v29 }
 0x32f   : > { %v2318_v34 = vpop.eup %1512  ;;  %v886_v41 = vmul.f32 1.442695, %v799_v13  ;;  %1101 = vmatpush.bf16.msra.mxu1 %v1074_v28  ;;  %v813_v56 = vsub.f32 %v1954_v62, %v2170_v61  ;;  %v1056_v9 = vpack.c.bf16 %v2172_v27, %v2167_v20  ;;  %v815_v58 = vsub.f32 %v1958_v0, %v2170_v61 }
 0x330   : > { %v987_v8 = vadd.f32 %v2221_v18, %v986_v15  ;;  %v1009_v26 = vadd.f32 %v2306_v52, %v1008_v5  ;;  %1522 = vpow2.f32 %v882_v31  ;;  %v890_v29 = vmul.f32 1.442695, %v801_v59 }
 0x331   : > { %v1072_v13 = vpack.c.bf16 %v1511_v14, %v1507_v33  ;;  %v894_v60 = vmul.f32 1.442695, %v803_v1  ;;  %v837_v27 = vsub.f32 %v2077_v47, %v2170_v61  ;;  %1524 = vpow2.f32 %v886_v41 }
 0x332   : > { %v988_v15 = vadd.f32 %v2226_v39, %v987_v8  ;;  %v1515_v8 = vpop.eup %1514  ;;  %v1010_v5 = vadd.f32 %v2318_v34, %v1009_v26  ;;  %1083 = vmatpush.bf16.msra.mxu0 %v1056_v9  ;;  %v898_v0 = vmul.f32 1.442695, %v805_v49  ;;  %v902_v31 = vmul.f32 1.442695, %v807_v40 }
 0x333   : > { %v2330_v17 = vpop.eup %1516  ;;  %1102 = vmatpush.bf16.msra.mxu1 %v1072_v13  ;;  %v1054_v1 = vpack.c.bf16 %v2161_v44, %v2154_v57  ;;  %v833_v9 = vsub.f32 %v2034_v38, %v2170_v61  ;;  %v839_v20 = vsub.f32 %v2089_v43, %v2170_v61  ;;  %1526 = vpow2.f32 %v890_v29 }
 0x334   : > { %v989_v54 = vadd.f32 %v2230_v19, %v988_v15  ;;  %v817_v15 = vsub.f32 %v1962_v2, %v2170_v61  ;;  %v1011_v62 = vadd.f32 %v2330_v17, %v1010_v5  ;;  %v2337_v26 = vpop.eup %1518  ;;  %v1070_v47 = vpack.c.bf16 %v1515_v8, %v2230_v19 }
 0x335   : > { %v2346_v5 = vpop.eup %1520  ;;  %1528 = vpow2.f32 %v894_v60  ;;  %v835_v57 = vsub.f32 %v2057_v16, %v2170_v61  ;;  %v910_v44 = vmul.f32 1.442695, %v811_v6  ;;  %v962_v38 = vmul.f32 1.442695, %v837_v27  ;;  %v2612_v27 = vld [vmem:[#allocation28_spill] sm:$0xff] }
 0x336   : > { %v990_v28 = vadd.f32 %v1515_v8, %v989_v54  ;;  %v1012_v54 = vadd.f32 %v2337_v26, %v1011_v62  ;;  %1084 = vmatpush.bf16.msra.mxu0 %v1054_v1  ;;  %v2354_v41 = vpop.eup %1522  ;;  %1530 = vpow2.f32 %v898_v0  ;;  %v821_v8 = vsub.f32 %v1972_v7, %v2170_v61  ;;  %v2613_v1 = vld [vmem:[#allocation31_spill] sm:$0xff] }
 0x337   : > { %1103 = vmatpush.bf16.msra.mxu1 %v1070_v47  ;;  %1532 = vpow2.f32 %v902_v31  ;;  %v829_v16 = vsub.f32 %v2002_v30, %v2170_v61  ;;  %v966_v29 = vmul.f32 1.442695, %v839_v20  ;;  %v1068_v6 = vpack.c.bf16 %v2226_v39, %v2221_v18  ;;  %v2615_v47 = vld [vmem:[#allocation33_spill] sm:$0xff] }
 0x338   : > { %v991_v59 = vadd.f32 %v1507_v33, %v990_v28  ;;  %v906_v33 = vmul.f32 1.442695, %v809_v22  ;;  %v1013_v40 = vadd.f32 %v2346_v5, %v1012_v54  ;;  %v2362_v22 = vpop.eup %1524  ;;  %v954_v13 = vmul.f32 1.442695, %v833_v9 }
 0x339   : > { %v914_v60 = vmul.f32 1.442695, %v813_v56  ;;  %v958_v62 = vmul.f32 1.442695, %v835_v57  ;;  %v825_v0 = vsub.f32 %v2612_v27, %v2170_v61  ;;  %v946_v54 = vmul.f32 1.442695, %v829_v16 }
 0x33a   : > { %v992_v49 = vadd.f32 %v1511_v14, %v991_v59  ;;  %v1014_v19 = vadd.f32 %v2354_v41, %v1013_v40  ;;  %v1052_v14 = vpack.c.bf16 %v2147_v36, %v2140_v35  ;;  %1534 = vpow2.f32 %v906_v33  ;;  %v2372_v35 = vpop.eup %1526  ;;  %v2617_v16 = vld [vmem:[#allocation27_spill] sm:$0xff] }
 0x33b   : > { %v831_v36 = vsub.f32 %v2016_v23, %v2170_v61  ;;  %1536 = vpow2.f32 %v910_v44  ;;  %1104 = vmatpush.bf16.msra.mxu1 %v1068_v6  ;;  %v2376_v30 = vpop.eup %1528  ;;  %v918_v59 = vmul.f32 1.442695, %v815_v58  ;;  %v1066_v23 = vpack.c.bf16 %v2217_v25, %v2212_v63 }
 0x33c   : > { %v993_v43 = vadd.f32 %v2274_v46, %v992_v49  ;;  %v1015_v28 = vadd.f32 %v2362_v22, %v1014_v19  ;;  %1085 = vmatpush.bf16.msra.mxu0 %v1052_v14  ;;  %1538 = vpow2.f32 %v962_v38  ;;  %v1531_v20 = vpop.eup %1530  ;;  %v2616_v40 = vsub.f32 %v1966_v4, %v2170_v61  ;;  %v389_v38 = vpop.permute.xlu2 %388 }
 0x33d   : > { %1540 = vpow2.f32 %v966_v29  ;;  %v1533_v56 = vpop.eup %1532  ;;  %v950_v58 = vmul.f32 1.442695, %v831_v36  ;;  %v2414_v4 = vpack.c.bf16 %v2289_v11, %v2247_v48  ;;  %v2427_v48 = vpack.c.bf16 %v2296_v45, %v2270_v21 }
 0x33e   : > { %v994_v46 = vadd.f32 %v2286_v37, %v993_v43  ;;  %v1016_v39 = vadd.f32 %v2372_v35, %v1015_v28  ;;  %v1050_v37 = vpack.c.bf16 %v2133_v12, %v2126_v10  ;;  %1542 = vpow2.f32 %v954_v13 }
 0x33f   : > { %v827_v10 = vsub.f32 %v2613_v1, %v2170_v61  ;;  %v922_v12 = vmul.f32 1.442695, %v817_v15  ;;  %1544 = vpow2.f32 %v958_v62  ;;  %1105 = vmatpush.bf16.msra.mxu1 %v1066_v23  ;;  %v926_v2 = vmul.f32 1.442695, %v2616_v40 }
 0x340   : > { %v995_v18 = vadd.f32 %v2235_v3, %v994_v46  ;;  %v1017_v3 = vadd.f32 %v2376_v30, %v1016_v39  ;;  %1086 = vmatpush.bf16.msra.mxu0 %v1050_v37  ;;  %v2393_v9 = vpop.eup %1534  ;;  %1546 = vpow2.f32 %v914_v60  ;;  %v1064_v15 = vpack.c.bf16 %v2208_v53, %v2203_v50 }
 0x341   : > { %v2398_v33 = vpop.eup %1536  ;;  %1548 = vpow2.f32 %v918_v59  ;;  %v1063_v57 = vpack.c.bf16 %v1533_v56, %v1531_v20  ;;  %v938_v43 = vmul.f32 1.442695, %v825_v0  ;;  %v823_v50 = vsub.f32 %v2617_v16, %v2170_v61 }
 0x342   : > { %v996_v31 = vadd.f32 %v2262_v32, %v995_v18  ;;  %v1018_v25 = vadd.f32 %v1531_v20, %v1017_v3  ;;  %v2614_v32 = vld [vmem:[#allocation30_spill] sm:$0xff]  ;;  %v2405_v44 = vpop.eup %1538  ;;  %1550 = vpow2.f32 %v946_v54  ;;  %v942_v53 = vmul.f32 1.442695, %v827_v10 }
 0x343   : > { %v1048_v49 = vpack.c.bf16 %v2615_v47, %v2614_v32  ;;  %v2410_v14 = vpop.eup %1540  ;;  %1552 = vpow2.f32 %v950_v58  ;;  %1106 = vmatpush.bf16.msra.mxu1 %v1064_v15  ;;  %v930_v11 = vmul.f32 1.442695, %v821_v8  ;;  %v1061_v13 = vpack.c.bf16 %v2376_v30, %v2372_v35 }
 0x344   : > { %v997_v63 = vadd.f32 %v2239_v24, %v996_v31  ;;  %v1019_v19 = vadd.f32 %v1533_v56, %v1018_v25  ;;  %v2418_v29 = vpop.eup %1542  ;;  %1554 = vpow2.f32 %v922_v12  ;;  %v1079_v6 = vpack.c.bf16 %v2410_v14, %v2405_v44  ;;  %v394_v37 = vpop.permute.xlu2 %393  ;;  %v2618_v31 = vld [vmem:[#allocation14_spill] sm:$0xff]  ;;  %v2620_v12 = vld [vmem:[#allocation15_spill] sm:$0xff] }
 0x345   : > { %1087 = vmatpush.bf16.msra.mxu0 %v1048_v49  ;;  %v2423_v46 = vpop.eup %1544  ;;  %1556 = vpow2.f32 %v926_v2  ;;  %v934_v62 = vmul.f32 1.442695, %v823_v50  ;;  %v1059_v8 = vpack.c.bf16 %v2362_v22, %v2354_v41  ;;  %v1057_v59 = vpack.c.bf16 %v2346_v5, %v2337_v26  ;;  %v2619_v41 = vld [vmem:[#allocation16_spill] sm:$0xff]  ;;  %v2623_v50 = vld [vmem:[#allocation35_spill] sm:$0xff] }
 0x346   : > { %v2408_v24 = vadd.f32 %v2244_v55, %v997_v63  ;;  %v1020_v55 = vadd.f32 %v2393_v9, %v1019_v19  ;;  %v1547_v28 = vpop.eup %1546  ;;  %1558 = vpow2.f32 %v938_v43  ;;  %1107 = vmatmul.bf16.vlgmr.msra.gmra.mxu1 %v2427_v48  ;;  %v1077_v7 = vpack.c.bf16 %v2423_v46, %v2418_v29  ;;  %v2621_v63 = vld [vmem:[#allocation17_spill] sm:$0xff] }
 0x347   : > { %1137 = vmatpush.bf16.msrb.mxu1 %v1079_v6  ;;  %v1549_v60 = vpop.eup %1548  ;;  %1560 = vpow2.f32 %v942_v53  ;;  %v400_v54 = vadd.f32 %v389_v38, %v2618_v31  ;;  %v402_v22 = vadd.f32 %v394_v37, %v2619_v41  ;;  %v401_v58 = vadd.f32 %v389_v38, %v2620_v12  ;;  %v2622_v43 = vld [vmem:[#allocation21_spill] sm:$0xff]  ;;  %v2624_v53 = vld [vmem:[#allocation18_spill] sm:$0xff] }
 0x348   : > { %1088 = vmatmul.bf16.vlgmr.msra.gmra.mxu0 %v2414_v4  ;;  %v1021_v36 = vadd.f32 %v2398_v33, %v1020_v55  ;;  %v1551_v21 = vpop.eup %1550  ;;  %1562 = vpow2.f32 %v930_v11  ;;  %v403_v25 = vadd.f32 %v394_v37, %v2621_v63  ;;  %v1055_v32 = vpack.c.bf16 %v2330_v17, %v2318_v34  ;;  %v1571_v37 = vld [vmem:[%s1802_s11 + $0x10] sm:$0xff]  ;;  %v1572_v41 = vld [vmem:[%s1802_s11 + $0x20] sm:$0xff] }
 0x349   : > { %1118 = vmatpush.bf16.msrb.mxu0 %v1063_v57  ;;  %v1553_v61 = vpop.eup %1552  ;;  %1564 = vpow2.f32 %v934_v62  ;;  %v1046_v26 = vpack.c.bf16 %v402_v22, %v400_v54  ;;  %v1053_v2 = vpack.c.bf16 %v2306_v52, %v2293_v42  ;;  %v1051_v17 = vpack.c.bf16 %v2622_v43, %v2267_v51 }
 0x34a   : > { %v1022_v45 = vadd.f32 %v1547_v28, %v1021_v36  ;;  %v1555_v35 = vpop.eup %1554  ;;  %v1075_v27 = vpack.c.bf16 %v1553_v61, %v1551_v21  ;;  %v1047_v40 = vpack.c.bf16 %v403_v25, %v401_v58  ;;  %v1067_v16 = vpack.c.bf16 %v1549_v60, %v1547_v28  ;;  %v1573_v25 = vld [vmem:[%s1802_s11 + $0x30] sm:$0xff] }
 0x34b   : > { %1138 = vmatpush.bf16.msrb.mxu1 %v1077_v7  ;;  %v1557_v18 = vpop.eup %1556  ;;  %v1049_v55 = vpack.c.bf16 %v2624_v53, %v2623_v50  ;;  %v1065_v6 = vpack.c.bf16 %v2398_v33, %v2393_v9  ;;  %v2465_v36 = vstv %s1156_s13 }
 0x34c   : > { %v1023_v30 = vadd.f32 %v1549_v60, %v1022_v45  ;;  %v1559_v39 = vpop.eup %1558  ;;  %v1069_v38 = vpack.c.bf16 %v1557_v18, %v1555_v35 }
 0x34d   : > { %1119 = vmatpush.bf16.msrb.mxu0 %v1061_v13  ;;  %v1561_v0 = vpop.eup %1560 }
 0x34e   : > { %v1024_v20 = vadd.f32 %v1555_v35, %v1023_v30  ;;  %v1563_v56 = vpop.eup %1562  ;;  %v1073_v1 = vpack.c.bf16 %v1561_v0, %v1559_v39 }
 0x34f   : > { %1139 = vmatpush.bf16.msrb.mxu1 %v1075_v27  ;;  %v1565_v10 = vpop.eup %1564 }
 0x350   : > { %v1025_v23 = vadd.f32 %v1557_v18, %v1024_v20  ;;  %v1071_v49 = vpack.c.bf16 %v1565_v10, %v1563_v56 }
 0x351   : > { %1120 = vmatpush.bf16.msrb.mxu0 %v1059_v8 }
 0x352   : > { %v1026_v3 = vadd.f32 %v1563_v56, %v1025_v23 }
 0x353   : > { %1140 = vmatpush.bf16.msrb.mxu1 %v1073_v1 }
 0x354   : > { %v1027_v47 = vadd.f32 %v1565_v10, %v1026_v3 }
 0x355   : > { %1121 = vmatpush.bf16.msrb.mxu0 %v1057_v59 }
 0x356   : > { %v1028_v5 = vadd.f32 %v1559_v39, %v1027_v47  ;;  %1112 = vmatmul.bf16.gmra.mxu1 %v1047_v40 }
 0x357   : > { %1141 = vmatpush.bf16.msrb.mxu1 %v1071_v49 }
 0x358   : > { %1093 = vmatmul.bf16.gmra.mxu0 %v1046_v26  ;;  %v1029_v15 = vadd.f32 %v1561_v0, %v1028_v5 }
 0x359   : > { %1122 = vmatpush.bf16.msrb.mxu0 %v1055_v32 }
 0x35a   : > { %v1030_v57 = vadd.f32 %v1551_v21, %v1029_v15  ;;  %v1570_v21 = vld [vmem:[%s1802_s11] sm:$0xff]  ;;  %v1574_v15 = vld [vmem:[%s1802_s11 + $0x8] sm:$0xff] }
 0x35b   : > { %1142 = vmatpush.bf16.msrb.mxu1 %v1069_v38 }
 0x35c   : > { %v1031_v34 = vadd.f32 %v1553_v61, %v1030_v57 }
 0x35d   : > { %1123 = vmatpush.bf16.msrb.mxu0 %v1053_v2 }
 0x35e   : > { %v1032_v19 = vadd.f32 %v2418_v29, %v1031_v34  ;;  %v999_v29 = vrot.slane %v2408_v24, 4 }
 0x35f   : > { %1143 = vmatpush.bf16.msrb.mxu1 %v1067_v16  ;;  %v1575_v16 = vld [vmem:[%s1802_s11 + $0x18] sm:$0xff] }
 0x360   : > { %v1033_v42 = vadd.f32 %v2423_v46, %v1032_v19  ;;  %v1000_v46 = vadd.f32 %v999_v29, %v2408_v24 }
 0x361   : > { %1124 = vmatpush.bf16.msrb.mxu0 %v1051_v17 }
 0x362   : > { %v1034_v52 = vadd.f32 %v2405_v44, %v1033_v42  ;;  %v1001_v11 = vrot.slane %v1000_v46, 2 }
 0x363   : > { %1144 = vmatpush.bf16.msrb.mxu1 %v1065_v6 }
 0x364   : > { %v1035_v51 = vadd.f32 %v2410_v14, %v1034_v52  ;;  %v1002_v13 = vadd.f32 %v1001_v11, %v1000_v46 }
 0x365   : > { %1125 = vmatpush.bf16.msrb.mxu0 %v1049_v55 }
 0x366   : > { %1145 = vmatmul.bf16.vlgmr.msrb.gmra.mxu1 %v2427_v48  ;;  %v1003_v44 = vrot.slane %v1002_v13, 1  ;;  %v1036_v60 = vrot.slane %v1035_v51, 4 }
 0x368   : > { %1126 = vmatmul.bf16.vlgmr.msrb.gmra.mxu0 %v2414_v4  ;;  %v1004_v28 = vadd.f32 %v1003_v44, %v1002_v13  ;;  %v1037_v7 = vadd.f32 %v1036_v60, %v1035_v51  ;;  %v1576_v51 = vld [vmem:[%s1802_s11 + $0x28] sm:$0xff] }
 0x36a   : > { %1566 = vrcp.f32 %v1004_v28  ;;  %v1038_v30 = vrot.slane %v1037_v7, 2  ;;  %v1577_v28 = vld [vmem:[%s1802_s11 + $0x38] sm:$0xff] }
 0x36c   : > { %v1039_v27 = vadd.f32 %v1038_v30, %v1037_v7 }
 0x36e   : > { %v1040_v56 = vrot.slane %v1039_v27, 1 }
 0x370   : > { %v1567_v4 = vpop.eup %1566  ;;  %v1041_v3 = vadd.f32 %v1040_v56, %v1039_v27 }
 0x372   : > { %1568 = vrcp.f32 %v1041_v3 }
 0x376   : > { %1150 = vmatmul.bf16.gmra.mxu1 %v1047_v40 }
 0x378   : > { %1131 = vmatmul.bf16.gmra.mxu0 %v1046_v26  ;;  %v1569_v5 = vpop.eup %1568 }
 0x3c3   : > { %v1108_v33 = vpop.f32.mrf.mxu1 }
 0x3c5   : > { %v1089_v9 = vpop.f32.mrf.mxu0 }
 0x3c6   : > { %v1109_v14 = vadd.f32 %v1108_v33, %v1089_v9 }
 0x3c8   : > { %v1157_v48 = vmul.f32 %v1567_v4, %v1109_v14 }
 0x3ca   : > { %v1166_v62 = vmul.f32 %v2465_v36, %v1157_v48 }
 0x3cb   : > { %v1110_v61 = vpop.f32.mrf.mxu1 }
 0x3cc   : > { %v1174_v45 = vadd.f32 %v1570_v21, %v1166_v62 }
 0x3cd   : > { %v1091_v24 = vpop.f32.mrf.mxu0 }
 0x3ce   : > { %1182 = vst [vmem:[%s2471_s14] sm:$0xff] %v1174_v45  ;;  %v1111_v8 = vadd.f32 %v1110_v61, %v1091_v24 }
 0x3d0   : > { %v1159_v35 = vmul.f32 %v1567_v4, %v1111_v8 }
 0x3d2   : > { %v1168_v18 = vmul.f32 %v2465_v36, %v1159_v35 }
 0x3d3   : > { %v1113_v0 = vpop.f32.mrf.mxu1 }
 0x3d4   : > { %v1176_v20 = vadd.f32 %v1571_v37, %v1168_v18 }
 0x3d5   : > { %v1094_v39 = vpop.f32.mrf.mxu0 }
 0x3d6   : > { %1184 = vst [vmem:[%s2471_s14 + $0x10] sm:$0xff] %v1176_v20  ;;  %v1114_v59 = vadd.f32 %v1113_v0, %v1094_v39 }
 0x3d8   : > { %v1161_v23 = vmul.f32 %v1567_v4, %v1114_v59 }
 0x3da   : > { %v1170_v31 = vmul.f32 %v2465_v36, %v1161_v23 }
 0x3db   : > { %v1115_v1 = vpop.f32.mrf.mxu1 }
 0x3dc   : > { %v1178_v22 = vadd.f32 %v1572_v41, %v1170_v31 }
 0x3dd   : > { %v1096_v54 = vpop.f32.mrf.mxu0 }
 0x3de   : > { %1186 = vst [vmem:[%s2471_s14 + $0x20] sm:$0xff] %v1178_v22  ;;  %v1116_v10 = vadd.f32 %v1115_v1, %v1096_v54 }
 0x3e0   : > { %v1163_v12 = vmul.f32 %v1567_v4, %v1116_v10 }
 0x3e2   : > { %v1172_v58 = vmul.f32 %v2465_v36, %v1163_v12 }
 0x3e3   : > { %v1146_v47 = vpop.f32.mrf.mxu1 }
 0x3e4   : > { %v1180_v32 = vadd.f32 %v1573_v25, %v1172_v58 }
 0x3e5   : > { %v1127_v63 = vpop.f32.mrf.mxu0 }
 0x3e6   : > { %1188 = vst [vmem:[%s2471_s14 + $0x30] sm:$0xff] %v1180_v32  ;;  %v1147_v26 = vadd.f32 %v1146_v47, %v1127_v63 }
 0x3e8   : > { %v1158_v49 = vmul.f32 %v1569_v5, %v1147_v26 }
 0x3ea   : > { %v1167_v40 = vmul.f32 %v2465_v36, %v1158_v49 }
 0x3eb   : > { %v1148_v38 = vpop.f32.mrf.mxu1 }
 0x3ec   : > { %v1175_v57 = vadd.f32 %v1574_v15, %v1167_v40 }
 0x3ed   : > { %v1129_v2 = vpop.f32.mrf.mxu0 }
 0x3ee   : > { %1183 = vst [vmem:[%s2471_s14 + $0x8] sm:$0xff] %v1175_v57  ;;  %v1149_v43 = vadd.f32 %v1148_v38, %v1129_v2 }
 0x3f0   : > { %v1160_v17 = vmul.f32 %v1569_v5, %v1149_v43 }
 0x3f2   : > { %v1169_v34 = vmul.f32 %v2465_v36, %v1160_v17 }
 0x3f3   : > { %v1151_v53 = vpop.f32.mrf.mxu1 }
 0x3f4   : > { %v1177_v50 = vadd.f32 %v1575_v16, %v1169_v34 }
 0x3f5   : > { %v1132_v19 = vpop.f32.mrf.mxu0 }
 0x3f6   : > { %1185 = vst [vmem:[%s2471_s14 + $0x18] sm:$0xff] %v1177_v50  ;;  %v1152_v55 = vadd.f32 %v1151_v53, %v1132_v19 }
 0x3f8   : > { %v1162_v42 = vmul.f32 %v1569_v5, %v1152_v55 }
 0x3fa   : > { %v1171_v52 = vmul.f32 %v2465_v36, %v1162_v42 }
 0x3fb   : > { %v1153_v46 = vpop.f32.mrf.mxu1 }
 0x3fc   : > { %v1179_v29 = vadd.f32 %v1576_v51, %v1171_v52 }
 0x3fd   : > { %v1134_v6 = vpop.f32.mrf.mxu0 }
 0x3fe   : > { %1187 = vst [vmem:[%s2471_s14 + $0x28] sm:$0xff] %v1179_v29  ;;  %v1154_v11 = vadd.f32 %v1153_v46, %v1134_v6 }
 0x400   : > { %v1164_v13 = vmul.f32 %v1569_v5, %v1154_v11 }
 0x402   : > { %v1173_v44 = vmul.f32 %v2465_v36, %v1164_v13 }
 0x404   : > { %v1181_v9 = vadd.f32 %v1577_v28, %v1173_v44 }
 0x406   : > { %1189 = vst [vmem:[%s2471_s14 + $0x38] sm:$0xff] %v1181_v9 }
 0x407   : > { %1635 = shalt.err (!%p1632_p4)
}
 0x408   : > { %s1680_s7 = smov 256   ;;  %s1681_s11 = smov 16  }
 0x409   : > { %1385 = dma.vmem_to_hbm [thread:$0]  (%p1760_p11), %s1204_s23, 1024, %s1206_s24, %s1191_s3, %s1680_s7, %s1680_s7, %s1681_s11  }
 0x40a PF: > { %s1220_s12 = sand.u32 1, %s1662_s17   ;;  %p2625_p7 = scmp.ge.s32.totalorder %s1674_s20, 2 }
 0x40b   : > { %s1221_s13 = scalar_lea.sflag [#allocation6], %s1220_s12 }
 0x40c   : > { %p1392_p5 = pnand %p2625_p7, %p1764_p12 }
 0x40e   : > { %p1393_p8 = pneg %p1392_p5 }
 0x410   : > { %1657 = dma.done.wait (%p1393_p8), %s1221_s13, 1024  }
 0x411   : > { %1659 = vsyncadd (%p1393_p8), %s1221_s13, 4294966272  ;;  %p18_p10 = scmp.ge.s32.totalorder %s1735_s22, 4   ;;  %s2626_s17 = smov %s1666_s18 }
 0x412   : > { %s2627_s18 = smov %s1670_s19  ;;  %s2628_s19 = smov %s1747_s25 }
 0x413   : > { %s2629_s20 = smov %s1735_s22  ;;  %20 = sbr.rel (!%p18_p10) target bundleno = 7 (0x7), region = 81 }
 0x418   :  { %1227 = vsyncpa [#allocation5], 1 }
 0x419   :  { %1229 = vsyncpa [#allocation5 + $0x1], 1 }
 0x41a   :  { %1230 = vsyncpa [#allocation6], 1 }
 0x41b   :  { %1232 = vsyncpa [#allocation6 + $0x1], 1 }

</bundles_post_ra>
